<compile_context>
chip_gen: v7x
topology: tpu7x:2x2x1
jax: 0.10.0
libtpu: 0.0.40
codegen_flags: <defaults>
</compile_context>

<pallas_src>
import jax
import jax.numpy as jnp
from jax import lax
from jax.experimental import pallas as pl
from jax.experimental.pallas import tpu as pltpu

PAD = 3          # max ksize // 2 over scales {3, 5, 7}
EPS = 1e-7


def _round_up(x, m):
    return ((x + m - 1) // m) * m


def _pick_tile_h(H, W, C, budget_bytes=24 * 1024 * 1024):
    """Largest multiple-of-8 row tile whose rough VMEM footprint fits the budget."""
    wpa = _round_up(W + 2 * PAD, 128)
    th = min(_round_up(H, 8), 256)
    while th > 8:
        thh = th + 2 * PAD
        est = 4 * ((C + 1) * thh * wpa + 2 * 12 * th * W + 24 * th * W)
        if est <= budget_bytes:
            break
        th -= 8
    return max(th, 8)


def make_mshf(N, C, H, W, rgb_scale=1.0, out_dtype=jnp.float32, tile_h=None):
    """Returns mshf(x): (N, C, H, W) float -> (N, 12, H, W) out_dtype (NCHW)."""
    assert H >= 4 and W >= 4, "reflection padding by 3 needs H, W >= 4"
    assert C >= 1

    if tile_h is None:
        tile_h = _pick_tile_h(H, W, C)
    TH = max(8, _round_up(min(tile_h, _round_up(H, 8)), 8))   # row-tile height
    THH = TH + 2 * PAD                                        # halo'd tile height
    nT = pl.cdiv(H, TH)                                       # row tiles per image
    WPA = _round_up(W + 2 * PAD, 128)                         # lane-aligned padded width
    HPA = nT * TH + 2 * PAD                                   # padded rows in HBM (halo-safe)

    # x*(255/rgb_scale) ... *(rgb_scale/255) cancels exactly for the 9 linear
    # outputs; for the fea branch it only shifts eps:
    #   sqrt(s^2*(d^2+4hv^2)+eps)/s == sqrt(d^2+4hv^2 + eps/s^2),  s = 255/rgb_scale
    eps_eff = float(EPS * (rgb_scale / 255.0) ** 2)
    inv_c = float(1.0 / C)

    def kernel(x_hbm, o_ref, buf, xbar_ref, sem):
        n = pl.program_id(0)
        t = pl.program_id(1)

        # ---- manual halo DMA: rows [t*TH, t*TH + THH) of image n, all channels ----
        row0 = pl.multiple_of(t * TH, 8)
        cp = pltpu.make_async_copy(
            x_hbm.at[pl.ds(n, 1), :, pl.ds(row0, THH), :],    # (1, C, THH, WPA)
            buf,
            sem.at[0],
        )
        cp.start()
        cp.wait()
        # NOTE: a cross-grid-step double buffer would hide this DMA entirely but
        # needs sequential ("arbitrary") grid semantics; kept single-buffered so
        # both grid axes stay megacore-parallel (output writeback is pipelined).

        # ---- channel-mean image (feeds the 9 linear outputs: mean∘conv == conv∘mean) ----
        acc = buf[0, 0, :, :]
        for c in range(1, C):
            acc = acc + buf[0, c, :, :]
        xbar_ref[...] = acc * inv_c

        def mwin(dy, dx):          # (TH, W) shifted window of the channel-mean image
            return xbar_ref[pl.ds(PAD + dy, TH), pl.ds(PAD + dx, W)]

        def cwin(c, dy, dx):       # (TH, W) shifted window of channel c
            return buf[0, c, pl.ds(PAD + dy, TH), pl.ds(PAD + dx, W)]

        def relu1(v):              # ReLU1 == Hardtanh(0, 1)
            return jnp.clip(v, 0.0, 1.0).astype(o_ref.dtype)

        cm = mwin(0, 0)            # center of the channel-mean image (shared by all scales)

        for si, p in enumerate((1, 2, 3)):       # ksize // 2 for ksize in (3, 5, 7)
            # -- linear branch: channel means of the depthwise hh / vv / hv convs --
            hh_m = mwin(0, -p) - 2.0 * cm + mwin(0, p)
            vv_m = mwin(-p, 0) - 2.0 * cm + mwin(p, 0)
            hv_m = mwin(-p, -p) - mwin(-p, p) - mwin(p, -p) + mwin(p, p)
            o_ref[0, 3 * si + 0, :, :] = relu1(hh_m)
            o_ref[0, 3 * si + 1, :, :] = relu1(vv_m)
            o_ref[0, 3 * si + 2, :, :] = relu1(hv_m)

            # -- nonlinear fea branch: needs per-channel hh / vv / hv --
            fea_acc = None
            for c in range(C):
                cen = cwin(c, 0, 0)
                hh = cwin(c, 0, -p) - 2.0 * cen + cwin(c, 0, p)
                vv = cwin(c, -p, 0) - 2.0 * cen + cwin(c, p, 0)
                hv = (cwin(c, -p, -p) - cwin(c, -p, p)
                      - cwin(c, p, -p) + cwin(c, p, p))
                d = hh - vv
                s = hh + vv
                fea = jnp.sqrt(d * d + 4.0 * (hv * hv) + eps_eff)   # EUP slot
                fk = 0.5 * (s + fea)
                fea_acc = fk if fea_acc is None else fea_acc + fk
            o_ref[0, 9 + si, :, :] = relu1(fea_acc * inv_c)

    # rough per-step VMEM footprint (input tile + mean image + double-buffered
    # output block + headroom for live temporaries) -> explicit scoped limit
    est = 4 * ((C + 1) * THH * WPA + 2 * 12 * TH * W + 24 * TH * W)
    vmem_limit = int(min(max(2 * est, 16 * 1024 * 1024), 48 * 1024 * 1024))

    call = pl.pallas_call(
        kernel,
        out_shape=jax.ShapeDtypeStruct((N, 12, H, W), out_dtype),
        grid_spec=pltpu.PrefetchScalarGridSpec(
            num_scalar_prefetch=0,
            grid=(N, nT),
            in_specs=[pl.BlockSpec(memory_space=pl.ANY)],      # stays in HBM; manual halo DMA
            out_specs=pl.BlockSpec((1, 12, TH, W), lambda n, t: (n, 0, t, 0)),
            scratch_shapes=[
                pltpu.VMEM((1, C, THH, WPA), jnp.float32),     # halo'd input tile
                pltpu.VMEM((THH, WPA), jnp.float32),           # channel-mean image
                pltpu.SemaphoreType.DMA((1,)),
            ],
        ),
        compiler_params=pltpu.CompilerParams(
            dimension_semantics=("parallel", "parallel"),
            vmem_limit_bytes=vmem_limit,
        ),
    )

    def mshf(x):
        x = x.astype(jnp.float32)
        # TODO(synk): reflection padding is done with one wrapper-side jnp.pad
        # (in-kernel reflected edge reads would need per-row gathers).
        xp = jnp.pad(x, ((0, 0), (0, 0), (PAD, PAD), (PAD, PAD)), mode="reflect")
        # zero-pad to lane-aligned width and to nT*TH rows so every halo window
        # of the manual DMA stays in bounds (extra rows/cols are never read for
        # valid output pixels).
        xp = jnp.pad(xp, ((0, 0), (0, 0),
                          (0, HPA - (H + 2 * PAD)),
                          (0, WPA - (W + 2 * PAD))))
        return call(xp)

    return mshf


# ----------------------- pure-JAX reference (for validation) -----------------------
def mshf_reference(x, rgb_scale=1.0):
    N, C, H, W = x.shape
    xs = x.astype(jnp.float32) * (255.0 / rgb_scale)

    def second_order(img, ksize, mode):
        p = ksize // 2
        k = jnp.zeros((ksize, ksize), jnp.float32)
        if mode == "h":
            k = k.at[p, 0].set(1.0).at[p, p].set(-2.0).at[p, -1].set(1.0)
        elif mode == "v":
            k = k.at[0, p].set(1.0).at[p, p].set(-2.0).at[-1, p].set(1.0)
        else:
            k = k.at[0, 0].set(1.0).at[0, -1].set(-1.0).at[-1, 0].set(-1.0).at[-1, -1].set(1.0)
        w = jnp.broadcast_to(k, (C, 1, ksize, ksize))   # depthwise weights
        imgp = jnp.pad(img, ((0, 0), (0, 0), (p, p), (p, p)), mode="reflect")
        return lax.conv_general_dilated(
            imgp, w, window_strides=(1, 1), padding="VALID",
            dimension_numbers=("NCHW", "OIHW", "NCHW"),
            feature_group_count=C, precision=lax.Precision.HIGHEST)

    outs, feas = [], []
    for ksize in (3, 5, 7):
        hh = second_order(xs, ksize, "h")
        vv = second_order(xs, ksize, "v")
        hv = second_order(xs, ksize, "hv")
        fea = jnp.sqrt(jnp.square(hh - vv) + 4.0 * jnp.square(hv) + EPS)
        fea_k = (hh + vv + fea) * 0.5
        outs += [jnp.mean(t, axis=1, keepdims=True) for t in (hh, vv, hv)]
        feas.append(jnp.mean(fea_k, axis=1, keepdims=True))
    out = jnp.concatenate(outs + feas, axis=1)
    return jnp.clip(out * (rgb_scale / 255.0), 0.0, 1.0)


if __name__ == "__main__":
    N, C, H, W = 2, 4, 16, 16
    key = jax.random.PRNGKey(0)
    x = jax.random.uniform(key, (N, C, H, W), dtype=jnp.float32)

    # tile_h=8 -> grid (N=2, row_tiles=2): exercises the halo'd spatial tiling path.
    mshf = make_mshf(N, C, H, W, rgb_scale=1.0, tile_h=8)
    out = jax.block_until_ready(mshf(x))
    assert out.shape == (N, 12, H, W), out.shape

    ref = jax.block_until_ready(mshf_reference(x, rgb_scale=1.0))
    err = float(jnp.max(jnp.abs(out - ref)))
    assert jnp.allclose(out, ref, rtol=1e-4, atol=1e-3), err

    print("KERNEL_OK")
</pallas_src>

<mosaic_0001>
module attributes {stable_mosaic.version = 11 : i64} {
  func.func @kernel(%arg0: i32, %arg1: i32, %arg2: memref<2x4x22x128xf32, #tpu.memory_space<any>>, %arg3: memref<1x12x8x16xf32, #tpu.memory_space<vmem>>, %arg4: memref<1x4x14x128xf32, #tpu.memory_space<vmem>>, %arg5: memref<14x128xf32, #tpu.memory_space<vmem>>, %arg6: memref<1x!tpu.dma_semaphore, #tpu.memory_space<semaphore_mem>>) attributes {dimension_semantics = [#tpu.dimension_semantics<parallel>, #tpu.dimension_semantics<parallel>], iteration_bounds = array<i64: 2, 2>, scalar_prefetch = 0 : i64, scratch_operands = 3 : i64, tpu.core_type = #tpu.core_type<tc>, window_params = [{}, {transform_indices = @transform_1, window_bounds = array<i64: 1, 12, 8, 16>}]} {
    %c8_i32 = arith.constant 8 : i32
    %0 = arith.muli %arg1, %c8_i32 : i32
    %1 = tpu.assume_multiple %0, 8 : i32
    %c0_i32 = arith.constant 0 : i32
    %c0_i32_0 = arith.constant 0 : i32
    %c0_i32_1 = arith.constant 0 : i32
    %2 = tpu.memref_slice %arg2[%arg0, %c0_i32_0, %1, %c0_i32_1] : memref<2x4x22x128xf32, #tpu.memory_space<any>> -> memref<1x4x14x128xf32, #tpu.memory_space<any>>
    %3 = tpu.memref_slice %arg6[%c0_i32] : memref<1x!tpu.dma_semaphore, #tpu.memory_space<semaphore_mem>> -> memref<1x!tpu.dma_semaphore, #tpu.memory_space<semaphore_mem>>
    %4 = tpu.memref_squeeze %3 : memref<1x!tpu.dma_semaphore, #tpu.memory_space<semaphore_mem>> -> memref<!tpu.dma_semaphore, #tpu.memory_space<semaphore_mem>>
    tpu.enqueue_dma source(%2 : memref<1x4x14x128xf32, #tpu.memory_space<any>>) target(%arg4 : memref<1x4x14x128xf32, #tpu.memory_space<vmem>>) target_semaphore(%4 : memref<!tpu.dma_semaphore, #tpu.memory_space<semaphore_mem>>)
    %c0_i32_2 = arith.constant 0 : i32
    %c0_i32_3 = arith.constant 0 : i32
    %c0_i32_4 = arith.constant 0 : i32
    %5 = tpu.memref_slice %arg2[%arg0, %c0_i32_3, %1, %c0_i32_4] : memref<2x4x22x128xf32, #tpu.memory_space<any>> -> memref<1x4x14x128xf32, #tpu.memory_space<any>>
    %6 = tpu.memref_slice %arg6[%c0_i32_2] : memref<1x!tpu.dma_semaphore, #tpu.memory_space<semaphore_mem>> -> memref<1x!tpu.dma_semaphore, #tpu.memory_space<semaphore_mem>>
    %7 = tpu.memref_squeeze %6 : memref<1x!tpu.dma_semaphore, #tpu.memory_space<semaphore_mem>> -> memref<!tpu.dma_semaphore, #tpu.memory_space<semaphore_mem>>
    tpu.wait_dma2 semaphore(%7 : memref<!tpu.dma_semaphore, #tpu.memory_space<semaphore_mem>>) src(%5 : memref<1x4x14x128xf32, #tpu.memory_space<any>>) dst(%arg4 : memref<1x4x14x128xf32, #tpu.memory_space<vmem>>)
    %c0 = arith.constant 0 : index
    %c0_5 = arith.constant 0 : index
    %c0_6 = arith.constant 0 : index
    %c0_7 = arith.constant 0 : index
    %8 = vector.load %arg4[%c0, %c0_5, %c0_6, %c0_7] : memref<1x4x14x128xf32, #tpu.memory_space<vmem>>, vector<1x1x14x128xf32>
    %9 = vector.shape_cast %8 : vector<1x1x14x128xf32> to vector<14x128xf32>
    %c0_8 = arith.constant 0 : index
    %c1 = arith.constant 1 : index
    %c0_9 = arith.constant 0 : index
    %c0_10 = arith.constant 0 : index
    %10 = vector.load %arg4[%c0_8, %c1, %c0_9, %c0_10] : memref<1x4x14x128xf32, #tpu.memory_space<vmem>>, vector<1x1x14x128xf32>
    %11 = vector.shape_cast %10 : vector<1x1x14x128xf32> to vector<14x128xf32>
    %12 = arith.addf %9, %11 : vector<14x128xf32>
    %c0_11 = arith.constant 0 : index
    %c2 = arith.constant 2 : index
    %c0_12 = arith.constant 0 : index
    %c0_13 = arith.constant 0 : index
    %13 = vector.load %arg4[%c0_11, %c2, %c0_12, %c0_13] : memref<1x4x14x128xf32, #tpu.memory_space<vmem>>, vector<1x1x14x128xf32>
    %14 = vector.shape_cast %13 : vector<1x1x14x128xf32> to vector<14x128xf32>
    %15 = arith.addf %12, %14 : vector<14x128xf32>
    %c0_14 = arith.constant 0 : index
    %c3 = arith.constant 3 : index
    %c0_15 = arith.constant 0 : index
    %c0_16 = arith.constant 0 : index
    %16 = vector.load %arg4[%c0_14, %c3, %c0_15, %c0_16] : memref<1x4x14x128xf32, #tpu.memory_space<vmem>>, vector<1x1x14x128xf32>
    %17 = vector.shape_cast %16 : vector<1x1x14x128xf32> to vector<14x128xf32>
    %18 = arith.addf %15, %17 : vector<14x128xf32>
    %cst = arith.constant 2.500000e-01 : f32
    %19 = vector.broadcast %cst : f32 to vector<14x128xf32>
    %20 = arith.mulf %18, %19 : vector<14x128xf32>
    %c0_17 = arith.constant 0 : index
    %c0_18 = arith.constant 0 : index
    %21 = vector.load %arg5[%c0_17, %c0_18] : memref<14x128xf32, #tpu.memory_space<vmem>>, vector<14x128xf32>
    tpu.vector_store %arg5[%c0_17, %c0_18], %20 {strides = array<i32>} : memref<14x128xf32, #tpu.memory_space<vmem>>, vector<14x128xf32>,
    %c3_19 = arith.constant 3 : index
    %c3_20 = arith.constant 3 : index
    %22 = vector.load %arg5[%c3_19, %c3_20] : memref<14x128xf32, #tpu.memory_space<vmem>>, vector<8x16xf32>
    %c3_21 = arith.constant 3 : index
    %c2_22 = arith.constant 2 : index
    %23 = vector.load %arg5[%c3_21, %c2_22] : memref<14x128xf32, #tpu.memory_space<vmem>>, vector<8x16xf32>
    %cst_23 = arith.constant 2.000000e+00 : f32
    %24 = vector.broadcast %cst_23 : f32 to vector<8x16xf32>
    %25 = arith.mulf %24, %22 : vector<8x16xf32>
    %26 = arith.subf %23, %25 : vector<8x16xf32>
    %c3_24 = arith.constant 3 : index
    %c4 = arith.constant 4 : index
    %27 = vector.load %arg5[%c3_24, %c4] : memref<14x128xf32, #tpu.memory_space<vmem>>, vector<8x16xf32>
    %28 = arith.addf %26, %27 : vector<8x16xf32>
    %c2_25 = arith.constant 2 : index
    %c3_26 = arith.constant 3 : index
    %29 = vector.load %arg5[%c2_25, %c3_26] : memref<14x128xf32, #tpu.memory_space<vmem>>, vector<8x16xf32>
    %cst_27 = arith.constant 2.000000e+00 : f32
    %30 = vector.broadcast %cst_27 : f32 to vector<8x16xf32>
    %31 = arith.mulf %30, %22 : vector<8x16xf32>
    %32 = arith.subf %29, %31 : vector<8x16xf32>
    %c4_28 = arith.constant 4 : index
    %c3_29 = arith.constant 3 : index
    %33 = vector.load %arg5[%c4_28, %c3_29] : memref<14x128xf32, #tpu.memory_space<vmem>>, vector<8x16xf32>
    %34 = arith.addf %32, %33 : vector<8x16xf32>
    %c2_30 = arith.constant 2 : index
    %c2_31 = arith.constant 2 : index
    %35 = vector.load %arg5[%c2_30, %c2_31] : memref<14x128xf32, #tpu.memory_space<vmem>>, vector<8x16xf32>
    %c2_32 = arith.constant 2 : index
    %c4_33 = arith.constant 4 : index
    %36 = vector.load %arg5[%c2_32, %c4_33] : memref<14x128xf32, #tpu.memory_space<vmem>>, vector<8x16xf32>
    %37 = arith.subf %35, %36 : vector<8x16xf32>
    %c4_34 = arith.constant 4 : index
    %c2_35 = arith.constant 2 : index
    %38 = vector.load %arg5[%c4_34, %c2_35] : memref<14x128xf32, #tpu.memory_space<vmem>>, vector<8x16xf32>
    %39 = arith.subf %37, %38 : vector<8x16xf32>
    %c4_36 = arith.constant 4 : index
    %c4_37 = arith.constant 4 : index
    %40 = vector.load %arg5[%c4_36, %c4_37] : memref<14x128xf32, #tpu.memory_space<vmem>>, vector<8x16xf32>
    %41 = arith.addf %39, %40 : vector<8x16xf32>
    %cst_38 = arith.constant 0.000000e+00 : f32
    %cst_39 = arith.constant 1.000000e+00 : f32
    %42 = vector.broadcast %cst_38 : f32 to vector<8x16xf32>
    %43 = arith.maximumf %42, %28 : vector<8x16xf32>
    %44 = vector.broadcast %cst_39 : f32 to vector<8x16xf32>
    %45 = arith.minimumf %44, %43 : vector<8x16xf32>
    %c0_40 = arith.constant 0 : index
    %c0_41 = arith.constant 0 : index
    %c0_42 = arith.constant 0 : index
    %c0_43 = arith.constant 0 : index
    %46 = vector.load %arg3[%c0_40, %c0_41, %c0_42, %c0_43] : memref<1x12x8x16xf32, #tpu.memory_space<vmem>>, vector<1x1x8x16xf32>
    %47 = vector.shape_cast %46 : vector<1x1x8x16xf32> to vector<8x16xf32>
    %48 = vector.shape_cast %45 : vector<8x16xf32> to vector<1x1x8x16xf32>
    tpu.vector_store %arg3[%c0_40, %c0_41, %c0_42, %c0_43], %48 {strides = array<i32>} : memref<1x12x8x16xf32, #tpu.memory_space<vmem>>, vector<1x1x8x16xf32>,
    %cst_44 = arith.constant 0.000000e+00 : f32
    %cst_45 = arith.constant 1.000000e+00 : f32
    %49 = vector.broadcast %cst_44 : f32 to vector<8x16xf32>
    %50 = arith.maximumf %49, %34 : vector<8x16xf32>
    %51 = vector.broadcast %cst_45 : f32 to vector<8x16xf32>
    %52 = arith.minimumf %51, %50 : vector<8x16xf32>
    %c0_46 = arith.constant 0 : index
    %c1_47 = arith.constant 1 : index
    %c0_48 = arith.constant 0 : index
    %c0_49 = arith.constant 0 : index
    %53 = vector.load %arg3[%c0_46, %c1_47, %c0_48, %c0_49] : memref<1x12x8x16xf32, #tpu.memory_space<vmem>>, vector<1x1x8x16xf32>
    %54 = vector.shape_cast %53 : vector<1x1x8x16xf32> to vector<8x16xf32>
    %55 = vector.shape_cast %52 : vector<8x16xf32> to vector<1x1x8x16xf32>
    tpu.vector_store %arg3[%c0_46, %c1_47, %c0_48, %c0_49], %55 {strides = array<i32>} : memref<1x12x8x16xf32, #tpu.memory_space<vmem>>, vector<1x1x8x16xf32>,
    %cst_50 = arith.constant 0.000000e+00 : f32
    %cst_51 = arith.constant 1.000000e+00 : f32
    %56 = vector.broadcast %cst_50 : f32 to vector<8x16xf32>
    %57 = arith.maximumf %56, %41 : vector<8x16xf32>
    %58 = vector.broadcast %cst_51 : f32 to vector<8x16xf32>
    %59 = arith.minimumf %58, %57 : vector<8x16xf32>
    %c0_52 = arith.constant 0 : index
    %c2_53 = arith.constant 2 : index
    %c0_54 = arith.constant 0 : index
    %c0_55 = arith.constant 0 : index
    %60 = vector.load %arg3[%c0_52, %c2_53, %c0_54, %c0_55] : memref<1x12x8x16xf32, #tpu.memory_space<vmem>>, vector<1x1x8x16xf32>
    %61 = vector.shape_cast %60 : vector<1x1x8x16xf32> to vector<8x16xf32>
    %62 = vector.shape_cast %59 : vector<8x16xf32> to vector<1x1x8x16xf32>
    tpu.vector_store %arg3[%c0_52, %c2_53, %c0_54, %c0_55], %62 {strides = array<i32>} : memref<1x12x8x16xf32, #tpu.memory_space<vmem>>, vector<1x1x8x16xf32>,
    %c0_56 = arith.constant 0 : index
    %c0_57 = arith.constant 0 : index
    %c3_58 = arith.constant 3 : index
    %c3_59 = arith.constant 3 : index
    %63 = vector.load %arg4[%c0_56, %c0_57, %c3_58, %c3_59] : memref<1x4x14x128xf32, #tpu.memory_space<vmem>>, vector<1x1x8x16xf32>
    %64 = vector.shape_cast %63 : vector<1x1x8x16xf32> to vector<8x16xf32>
    %c0_60 = arith.constant 0 : index
    %c0_61 = arith.constant 0 : index
    %c3_62 = arith.constant 3 : index
    %c2_63 = arith.constant 2 : index
    %65 = vector.load %arg4[%c0_60, %c0_61, %c3_62, %c2_63] : memref<1x4x14x128xf32, #tpu.memory_space<vmem>>, vector<1x1x8x16xf32>
    %66 = vector.shape_cast %65 : vector<1x1x8x16xf32> to vector<8x16xf32>
    %cst_64 = arith.constant 2.000000e+00 : f32
    %67 = vector.broadcast %cst_64 : f32 to vector<8x16xf32>
    %68 = arith.mulf %67, %64 : vector<8x16xf32>
    %69 = arith.subf %66, %68 : vector<8x16xf32>
    %c0_65 = arith.constant 0 : index
    %c0_66 = arith.constant 0 : index
    %c3_67 = arith.constant 3 : index
    %c4_68 = arith.constant 4 : index
    %70 = vector.load %arg4[%c0_65, %c0_66, %c3_67, %c4_68] : memref<1x4x14x128xf32, #tpu.memory_space<vmem>>, vector<1x1x8x16xf32>
    %71 = vector.shape_cast %70 : vector<1x1x8x16xf32> to vector<8x16xf32>
    %72 = arith.addf %69, %71 : vector<8x16xf32>
    %c0_69 = arith.constant 0 : index
    %c0_70 = arith.constant 0 : index
    %c2_71 = arith.constant 2 : index
    %c3_72 = arith.constant 3 : index
    %73 = vector.load %arg4[%c0_69, %c0_70, %c2_71, %c3_72] : memref<1x4x14x128xf32, #tpu.memory_space<vmem>>, vector<1x1x8x16xf32>
    %74 = vector.shape_cast %73 : vector<1x1x8x16xf32> to vector<8x16xf32>
    %cst_73 = arith.constant 2.000000e+00 : f32
    %75 = vector.broadcast %cst_73 : f32 to vector<8x16xf32>
    %76 = arith.mulf %75, %64 : vector<8x16xf32>
    %77 = arith.subf %74, %76 : vector<8x16xf32>
    %c0_74 = arith.constant 0 : index
    %c0_75 = arith.constant 0 : index
    %c4_76 = arith.constant 4 : index
    %c3_77 = arith.constant 3 : index
    %78 = vector.load %arg4[%c0_74, %c0_75, %c4_76, %c3_77] : memref<1x4x14x128xf32, #tpu.memory_space<vmem>>, vector<1x1x8x16xf32>
    %79 = vector.shape_cast %78 : vector<1x1x8x16xf32> to vector<8x16xf32>
    %80 = arith.addf %77, %79 : vector<8x16xf32>
    %c0_78 = arith.constant 0 : index
    %c0_79 = arith.constant 0 : index
    %c2_80 = arith.constant 2 : index
    %c2_81 = arith.constant 2 : index
    %81 = vector.load %arg4[%c0_78, %c0_79, %c2_80, %c2_81] : memref<1x4x14x128xf32, #tpu.memory_space<vmem>>, vector<1x1x8x16xf32>
    %82 = vector.shape_cast %81 : vector<1x1x8x16xf32> to vector<8x16xf32>
    %c0_82 = arith.constant 0 : index
    %c0_83 = arith.constant 0 : index
    %c2_84 = arith.constant 2 : index
    %c4_85 = arith.constant 4 : index
    %83 = vector.load %arg4[%c0_82, %c0_83, %c2_84, %c4_85] : memref<1x4x14x128xf32, #tpu.memory_space<vmem>>, vector<1x1x8x16xf32>
    %84 = vector.shape_cast %83 : vector<1x1x8x16xf32> to vector<8x16xf32>
    %85 = arith.subf %82, %84 : vector<8x16xf32>
    %c0_86 = arith.constant 0 : index
    %c0_87 = arith.constant 0 : index
    %c4_88 = arith.constant 4 : index
    %c2_89 = arith.constant 2 : index
    %86 = vector.load %arg4[%c0_86, %c0_87, %c4_88, %c2_89] : memref<1x4x14x128xf32, #tpu.memory_space<vmem>>, vector<1x1x8x16xf32>
    %87 = vector.shape_cast %86 : vector<1x1x8x16xf32> to vector<8x16xf32>
    %88 = arith.subf %85, %87 : vector<8x16xf32>
    %c0_90 = arith.constant 0 : index
    %c0_91 = arith.constant 0 : index
    %c4_92 = arith.constant 4 : index
    %c4_93 = arith.constant 4 : index
    %89 = vector.load %arg4[%c0_90, %c0_91, %c4_92, %c4_93] : memref<1x4x14x128xf32, #tpu.memory_space<vmem>>, vector<1x1x8x16xf32>
    %90 = vector.shape_cast %89 : vector<1x1x8x16xf32> to vector<8x16xf32>
    %91 = arith.addf %88, %90 : vector<8x16xf32>
    %92 = arith.subf %72, %80 : vector<8x16xf32>
    %93 = arith.addf %72, %80 : vector<8x16xf32>
    %94 = arith.mulf %92, %92 : vector<8x16xf32>
    %95 = arith.mulf %91, %91 : vector<8x16xf32>
    %cst_94 = arith.constant 4.000000e+00 : f32
    %96 = vector.broadcast %cst_94 : f32 to vector<8x16xf32>
    %97 = arith.mulf %96, %95 : vector<8x16xf32>
    %98 = arith.addf %94, %97 : vector<8x16xf32>
    %cst_95 = arith.constant 1.53787009E-12 : f32
    %99 = vector.broadcast %cst_95 : f32 to vector<8x16xf32>
    %100 = arith.addf %98, %99 : vector<8x16xf32>
    %101 = math.sqrt %100 : vector<8x16xf32>
    %102 = arith.addf %93, %101 : vector<8x16xf32>
    %cst_96 = arith.constant 5.000000e-01 : f32
    %103 = vector.broadcast %cst_96 : f32 to vector<8x16xf32>
    %104 = arith.mulf %103, %102 : vector<8x16xf32>
    %c0_97 = arith.constant 0 : index
    %c1_98 = arith.constant 1 : index
    %c3_99 = arith.constant 3 : index
    %c3_100 = arith.constant 3 : index
    %105 = vector.load %arg4[%c0_97, %c1_98, %c3_99, %c3_100] : memref<1x4x14x128xf32, #tpu.memory_space<vmem>>, vector<1x1x8x16xf32>
    %106 = vector.shape_cast %105 : vector<1x1x8x16xf32> to vector<8x16xf32>
    %c0_101 = arith.constant 0 : index
    %c1_102 = arith.constant 1 : index
    %c3_103 = arith.constant 3 : index
    %c2_104 = arith.constant 2 : index
    %107 = vector.load %arg4[%c0_101, %c1_102, %c3_103, %c2_104] : memref<1x4x14x128xf32, #tpu.memory_space<vmem>>, vector<1x1x8x16xf32>
    %108 = vector.shape_cast %107 : vector<1x1x8x16xf32> to vector<8x16xf32>
    %cst_105 = arith.constant 2.000000e+00 : f32
    %109 = vector.broadcast %cst_105 : f32 to vector<8x16xf32>
    %110 = arith.mulf %109, %106 : vector<8x16xf32>
    %111 = arith.subf %108, %110 : vector<8x16xf32>
    %c0_106 = arith.constant 0 : index
    %c1_107 = arith.constant 1 : index
    %c3_108 = arith.constant 3 : index
    %c4_109 = arith.constant 4 : index
    %112 = vector.load %arg4[%c0_106, %c1_107, %c3_108, %c4_109] : memref<1x4x14x128xf32, #tpu.memory_space<vmem>>, vector<1x1x8x16xf32>
    %113 = vector.shape_cast %112 : vector<1x1x8x16xf32> to vector<8x16xf32>
    %114 = arith.addf %111, %113 : vector<8x16xf32>
    %c0_110 = arith.constant 0 : index
    %c1_111 = arith.constant 1 : index
    %c2_112 = arith.constant 2 : index
    %c3_113 = arith.constant 3 : index
    %115 = vector.load %arg4[%c0_110, %c1_111, %c2_112, %c3_113] : memref<1x4x14x128xf32, #tpu.memory_space<vmem>>, vector<1x1x8x16xf32>
    %116 = vector.shape_cast %115 : vector<1x1x8x16xf32> to vector<8x16xf32>
    %cst_114 = arith.constant 2.000000e+00 : f32
    %117 = vector.broadcast %cst_114 : f32 to vector<8x16xf32>
    %118 = arith.mulf %117, %106 : vector<8x16xf32>
    %119 = arith.subf %116, %118 : vector<8x16xf32>
    %c0_115 = arith.constant 0 : index
    %c1_116 = arith.constant 1 : index
    %c4_117 = arith.constant 4 : index
    %c3_118 = arith.constant 3 : index
    %120 = vector.load %arg4[%c0_115, %c1_116, %c4_117, %c3_118] : memref<1x4x14x128xf32, #tpu.memory_space<vmem>>, vector<1x1x8x16xf32>
    %121 = vector.shape_cast %120 : vector<1x1x8x16xf32> to vector<8x16xf32>
    %122 = arith.addf %119, %121 : vector<8x16xf32>
    %c0_119 = arith.constant 0 : index
    %c1_120 = arith.constant 1 : index
    %c2_121 = arith.constant 2 : index
    %c2_122 = arith.constant 2 : index
    %123 = vector.load %arg4[%c0_119, %c1_120, %c2_121, %c2_122] : memref<1x4x14x128xf32, #tpu.memory_space<vmem>>, vector<1x1x8x16xf32>
    %124 = vector.shape_cast %123 : vector<1x1x8x16xf32> to vector<8x16xf32>
    %c0_123 = arith.constant 0 : index
    %c1_124 = arith.constant 1 : index
    %c2_125 = arith.constant 2 : index
    %c4_126 = arith.constant 4 : index
    %125 = vector.load %arg4[%c0_123, %c1_124, %c2_125, %c4_126] : memref<1x4x14x128xf32, #tpu.memory_space<vmem>>, vector<1x1x8x16xf32>
    %126 = vector.shape_cast %125 : vector<1x1x8x16xf32> to vector<8x16xf32>
    %127 = arith.subf %124, %126 : vector<8x16xf32>
    %c0_127 = arith.constant 0 : index
    %c1_128 = arith.constant 1 : index
    %c4_129 = arith.constant 4 : index
    %c2_130 = arith.constant 2 : index
    %128 = vector.load %arg4[%c0_127, %c1_128, %c4_129, %c2_130] : memref<1x4x14x128xf32, #tpu.memory_space<vmem>>, vector<1x1x8x16xf32>
    %129 = vector.shape_cast %128 : vector<1x1x8x16xf32> to vector<8x16xf32>
    %130 = arith.subf %127, %129 : vector<8x16xf32>
    %c0_131 = arith.constant 0 : index
    %c1_132 = arith.constant 1 : index
    %c4_133 = arith.constant 4 : index
    %c4_134 = arith.constant 4 : index
    %131 = vector.load %arg4[%c0_131, %c1_132, %c4_133, %c4_134] : memref<1x4x14x128xf32, #tpu.memory_space<vmem>>, vector<1x1x8x16xf32>
    %132 = vector.shape_cast %131 : vector<1x1x8x16xf32> to vector<8x16xf32>
    %133 = arith.addf %130, %132 : vector<8x16xf32>
    %134 = arith.subf %114, %122 : vector<8x16xf32>
    %135 = arith.addf %114, %122 : vector<8x16xf32>
    %136 = arith.mulf %134, %134 : vector<8x16xf32>
    %137 = arith.mulf %133, %133 : vector<8x16xf32>
    %cst_135 = arith.constant 4.000000e+00 : f32
    %138 = vector.broadcast %cst_135 : f32 to vector<8x16xf32>
    %139 = arith.mulf %138, %137 : vector<8x16xf32>
    %140 = arith.addf %136, %139 : vector<8x16xf32>
    %cst_136 = arith.constant 1.53787009E-12 : f32
    %141 = vector.broadcast %cst_136 : f32 to vector<8x16xf32>
    %142 = arith.addf %140, %141 : vector<8x16xf32>
    %143 = math.sqrt %142 : vector<8x16xf32>
    %144 = arith.addf %135, %143 : vector<8x16xf32>
    %cst_137 = arith.constant 5.000000e-01 : f32
    %145 = vector.broadcast %cst_137 : f32 to vector<8x16xf32>
    %146 = arith.mulf %145, %144 : vector<8x16xf32>
    %147 = arith.addf %104, %146 : vector<8x16xf32>
    %c0_138 = arith.constant 0 : index
    %c2_139 = arith.constant 2 : index
    %c3_140 = arith.constant 3 : index
    %c3_141 = arith.constant 3 : index
    %148 = vector.load %arg4[%c0_138, %c2_139, %c3_140, %c3_141] : memref<1x4x14x128xf32, #tpu.memory_space<vmem>>, vector<1x1x8x16xf32>
    %149 = vector.shape_cast %148 : vector<1x1x8x16xf32> to vector<8x16xf32>
    %c0_142 = arith.constant 0 : index
    %c2_143 = arith.constant 2 : index
    %c3_144 = arith.constant 3 : index
    %c2_145 = arith.constant 2 : index
    %150 = vector.load %arg4[%c0_142, %c2_143, %c3_144, %c2_145] : memref<1x4x14x128xf32, #tpu.memory_space<vmem>>, vector<1x1x8x16xf32>
    %151 = vector.shape_cast %150 : vector<1x1x8x16xf32> to vector<8x16xf32>
    %cst_146 = arith.constant 2.000000e+00 : f32
    %152 = vector.broadcast %cst_146 : f32 to vector<8x16xf32>
    %153 = arith.mulf %152, %149 : vector<8x16xf32>
    %154 = arith.subf %151, %153 : vector<8x16xf32>
    %c0_147 = arith.constant 0 : index
    %c2_148 = arith.constant 2 : index
    %c3_149 = arith.constant 3 : index
    %c4_150 = arith.constant 4 : index
    %155 = vector.load %arg4[%c0_147, %c2_148, %c3_149, %c4_150] : memref<1x4x14x128xf32, #tpu.memory_space<vmem>>, vector<1x1x8x16xf32>
    %156 = vector.shape_cast %155 : vector<1x1x8x16xf32> to vector<8x16xf32>
    %157 = arith.addf %154, %156 : vector<8x16xf32>
    %c0_151 = arith.constant 0 : index
    %c2_152 = arith.constant 2 : index
    %c2_153 = arith.constant 2 : index
    %c3_154 = arith.constant 3 : index
    %158 = vector.load %arg4[%c0_151, %c2_152, %c2_153, %c3_154] : memref<1x4x14x128xf32, #tpu.memory_space<vmem>>, vector<1x1x8x16xf32>
    %159 = vector.shape_cast %158 : vector<1x1x8x16xf32> to vector<8x16xf32>
    %cst_155 = arith.constant 2.000000e+00 : f32
    %160 = vector.broadcast %cst_155 : f32 to vector<8x16xf32>
    %161 = arith.mulf %160, %149 : vector<8x16xf32>
    %162 = arith.subf %159, %161 : vector<8x16xf32>
    %c0_156 = arith.constant 0 : index
    %c2_157 = arith.constant 2 : index
    %c4_158 = arith.constant 4 : index
    %c3_159 = arith.constant 3 : index
    %163 = vector.load %arg4[%c0_156, %c2_157, %c4_158, %c3_159] : memref<1x4x14x128xf32, #tpu.memory_space<vmem>>, vector<1x1x8x16xf32>
    %164 = vector.shape_cast %163 : vector<1x1x8x16xf32> to vector<8x16xf32>
    %165 = arith.addf %162, %164 : vector<8x16xf32>
    %c0_160 = arith.constant 0 : index
    %c2_161 = arith.constant 2 : index
    %c2_162 = arith.constant 2 : index
    %c2_163 = arith.constant 2 : index
    %166 = vector.load %arg4[%c0_160, %c2_161, %c2_162, %c2_163] : memref<1x4x14x128xf32, #tpu.memory_space<vmem>>, vector<1x1x8x16xf32>
    %167 = vector.shape_cast %166 : vector<1x1x8x16xf32> to vector<8x16xf32>
    %c0_164 = arith.constant 0 : index
    %c2_165 = arith.constant 2 : index
    %c2_166 = arith.constant 2 : index
    %c4_167 = arith.constant 4 : index
    %168 = vector.load %arg4[%c0_164, %c2_165, %c2_166, %c4_167] : memref<1x4x14x128xf32, #tpu.memory_space<vmem>>, vector<1x1x8x16xf32>
    %169 = vector.shape_cast %168 : vector<1x1x8x16xf32> to vector<8x16xf32>
    %170 = arith.subf %167, %169 : vector<8x16xf32>
    %c0_168 = arith.constant 0 : index
    %c2_169 = arith.constant 2 : index
    %c4_170 = arith.constant 4 : index
    %c2_171 = arith.constant 2 : index
    %171 = vector.load %arg4[%c0_168, %c2_169, %c4_170, %c2_171] : memref<1x4x14x128xf32, #tpu.memory_space<vmem>>, vector<1x1x8x16xf32>
    %172 = vector.shape_cast %171 : vector<1x1x8x16xf32> to vector<8x16xf32>
    %173 = arith.subf %170, %172 : vector<8x16xf32>
    %c0_172 = arith.constant 0 : index
    %c2_173 = arith.constant 2 : index
    %c4_174 = arith.constant 4 : index
    %c4_175 = arith.constant 4 : index
    %174 = vector.load %arg4[%c0_172, %c2_173, %c4_174, %c4_175] : memref<1x4x14x128xf32, #tpu.memory_space<vmem>>, vector<1x1x8x16xf32>
    %175 = vector.shape_cast %174 : vector<1x1x8x16xf32> to vector<8x16xf32>
    %176 = arith.addf %173, %175 : vector<8x16xf32>
    %177 = arith.subf %157, %165 : vector<8x16xf32>
    %178 = arith.addf %157, %165 : vector<8x16xf32>
    %179 = arith.mulf %177, %177 : vector<8x16xf32>
    %180 = arith.mulf %176, %176 : vector<8x16xf32>
    %cst_176 = arith.constant 4.000000e+00 : f32
    %181 = vector.broadcast %cst_176 : f32 to vector<8x16xf32>
    %182 = arith.mulf %181, %180 : vector<8x16xf32>
    %183 = arith.addf %179, %182 : vector<8x16xf32>
    %cst_177 = arith.constant 1.53787009E-12 : f32
    %184 = vector.broadcast %cst_177 : f32 to vector<8x16xf32>
    %185 = arith.addf %183, %184 : vector<8x16xf32>
    %186 = math.sqrt %185 : vector<8x16xf32>
    %187 = arith.addf %178, %186 : vector<8x16xf32>
    %cst_178 = arith.constant 5.000000e-01 : f32
    %188 = vector.broadcast %cst_178 : f32 to vector<8x16xf32>
    %189 = arith.mulf %188, %187 : vector<8x16xf32>
    %190 = arith.addf %147, %189 : vector<8x16xf32>
    %c0_179 = arith.constant 0 : index
    %c3_180 = arith.constant 3 : index
    %c3_181 = arith.constant 3 : index
    %c3_182 = arith.constant 3 : index
    %191 = vector.load %arg4[%c0_179, %c3_180, %c3_181, %c3_182] : memref<1x4x14x128xf32, #tpu.memory_space<vmem>>, vector<1x1x8x16xf32>
    %192 = vector.shape_cast %191 : vector<1x1x8x16xf32> to vector<8x16xf32>
    %c0_183 = arith.constant 0 : index
    %c3_184 = arith.constant 3 : index
    %c3_185 = arith.constant 3 : index
    %c2_186 = arith.constant 2 : index
    %193 = vector.load %arg4[%c0_183, %c3_184, %c3_185, %c2_186] : memref<1x4x14x128xf32, #tpu.memory_space<vmem>>, vector<1x1x8x16xf32>
    %194 = vector.shape_cast %193 : vector<1x1x8x16xf32> to vector<8x16xf32>
    %cst_187 = arith.constant 2.000000e+00 : f32
    %195 = vector.broadcast %cst_187 : f32 to vector<8x16xf32>
    %196 = arith.mulf %195, %192 : vector<8x16xf32>
    %197 = arith.subf %194, %196 : vector<8x16xf32>
    %c0_188 = arith.constant 0 : index
    %c3_189 = arith.constant 3 : index
    %c3_190 = arith.constant 3 : index
    %c4_191 = arith.constant 4 : index
    %198 = vector.load %arg4[%c0_188, %c3_189, %c3_190, %c4_191] : memref<1x4x14x128xf32, #tpu.memory_space<vmem>>, vector<1x1x8x16xf32>
    %199 = vector.shape_cast %198 : vector<1x1x8x16xf32> to vector<8x16xf32>
    %200 = arith.addf %197, %199 : vector<8x16xf32>
    %c0_192 = arith.constant 0 : index
    %c3_193 = arith.constant 3 : index
    %c2_194 = arith.constant 2 : index
    %c3_195 = arith.constant 3 : index
    %201 = vector.load %arg4[%c0_192, %c3_193, %c2_194, %c3_195] : memref<1x4x14x128xf32, #tpu.memory_space<vmem>>, vector<1x1x8x16xf32>
    %202 = vector.shape_cast %201 : vector<1x1x8x16xf32> to vector<8x16xf32>
    %cst_196 = arith.constant 2.000000e+00 : f32
    %203 = vector.broadcast %cst_196 : f32 to vector<8x16xf32>
    %204 = arith.mulf %203, %192 : vector<8x16xf32>
    %205 = arith.subf %202, %204 : vector<8x16xf32>
    %c0_197 = arith.constant 0 : index
    %c3_198 = arith.constant 3 : index
    %c4_199 = arith.constant 4 : index
    %c3_200 = arith.constant 3 : index
    %206 = vector.load %arg4[%c0_197, %c3_198, %c4_199, %c3_200] : memref<1x4x14x128xf32, #tpu.memory_space<vmem>>, vector<1x1x8x16xf32>
    %207 = vector.shape_cast %206 : vector<1x1x8x16xf32> to vector<8x16xf32>
    %208 = arith.addf %205, %207 : vector<8x16xf32>
    %c0_201 = arith.constant 0 : index
    %c3_202 = arith.constant 3 : index
    %c2_203 = arith.constant 2 : index
    %c2_204 = arith.constant 2 : index
    %209 = vector.load %arg4[%c0_201, %c3_202, %c2_203, %c2_204] : memref<1x4x14x128xf32, #tpu.memory_space<vmem>>, vector<1x1x8x16xf32>
    %210 = vector.shape_cast %209 : vector<1x1x8x16xf32> to vector<8x16xf32>
    %c0_205 = arith.constant 0 : index
    %c3_206 = arith.constant 3 : index
    %c2_207 = arith.constant 2 : index
    %c4_208 = arith.constant 4 : index
    %211 = vector.load %arg4[%c0_205, %c3_206, %c2_207, %c4_208] : memref<1x4x14x128xf32, #tpu.memory_space<vmem>>, vector<1x1x8x16xf32>
    %212 = vector.shape_cast %211 : vector<1x1x8x16xf32> to vector<8x16xf32>
    %213 = arith.subf %210, %212 : vector<8x16xf32>
    %c0_209 = arith.constant 0 : index
    %c3_210 = arith.constant 3 : index
    %c4_211 = arith.constant 4 : index
    %c2_212 = arith.constant 2 : index
    %214 = vector.load %arg4[%c0_209, %c3_210, %c4_211, %c2_212] : memref<1x4x14x128xf32, #tpu.memory_space<vmem>>, vector<1x1x8x16xf32>
    %215 = vector.shape_cast %214 : vector<1x1x8x16xf32> to vector<8x16xf32>
    %216 = arith.subf %213, %215 : vector<8x16xf32>
    %c0_213 = arith.constant 0 : index
    %c3_214 = arith.constant 3 : index
    %c4_215 = arith.constant 4 : index
    %c4_216 = arith.constant 4 : index
    %217 = vector.load %arg4[%c0_213, %c3_214, %c4_215, %c4_216] : memref<1x4x14x128xf32, #tpu.memory_space<vmem>>, vector<1x1x8x16xf32>
    %218 = vector.shape_cast %217 : vector<1x1x8x16xf32> to vector<8x16xf32>
    %219 = arith.addf %216, %218 : vector<8x16xf32>
    %220 = arith.subf %200, %208 : vector<8x16xf32>
    %221 = arith.addf %200, %208 : vector<8x16xf32>
    %222 = arith.mulf %220, %220 : vector<8x16xf32>
    %223 = arith.mulf %219, %219 : vector<8x16xf32>
    %cst_217 = arith.constant 4.000000e+00 : f32
    %224 = vector.broadcast %cst_217 : f32 to vector<8x16xf32>
    %225 = arith.mulf %224, %223 : vector<8x16xf32>
    %226 = arith.addf %222, %225 : vector<8x16xf32>
    %cst_218 = arith.constant 1.53787009E-12 : f32
    %227 = vector.broadcast %cst_218 : f32 to vector<8x16xf32>
    %228 = arith.addf %226, %227 : vector<8x16xf32>
    %229 = math.sqrt %228 : vector<8x16xf32>
    %230 = arith.addf %221, %229 : vector<8x16xf32>
    %cst_219 = arith.constant 5.000000e-01 : f32
    %231 = vector.broadcast %cst_219 : f32 to vector<8x16xf32>
    %232 = arith.mulf %231, %230 : vector<8x16xf32>
    %233 = arith.addf %190, %232 : vector<8x16xf32>
    %cst_220 = arith.constant 2.500000e-01 : f32
    %234 = vector.broadcast %cst_220 : f32 to vector<8x16xf32>
    %235 = arith.mulf %233, %234 : vector<8x16xf32>
    %cst_221 = arith.constant 0.000000e+00 : f32
    %cst_222 = arith.constant 1.000000e+00 : f32
    %236 = vector.broadcast %cst_221 : f32 to vector<8x16xf32>
    %237 = arith.maximumf %236, %235 : vector<8x16xf32>
    %238 = vector.broadcast %cst_222 : f32 to vector<8x16xf32>
    %239 = arith.minimumf %238, %237 : vector<8x16xf32>
    %c0_223 = arith.constant 0 : index
    %c9 = arith.constant 9 : index
    %c0_224 = arith.constant 0 : index
    %c0_225 = arith.constant 0 : index
    %240 = vector.load %arg3[%c0_223, %c9, %c0_224, %c0_225] : memref<1x12x8x16xf32, #tpu.memory_space<vmem>>, vector<1x1x8x16xf32>
    %241 = vector.shape_cast %240 : vector<1x1x8x16xf32> to vector<8x16xf32>
    %242 = vector.shape_cast %239 : vector<8x16xf32> to vector<1x1x8x16xf32>
    tpu.vector_store %arg3[%c0_223, %c9, %c0_224, %c0_225], %242 {strides = array<i32>} : memref<1x12x8x16xf32, #tpu.memory_space<vmem>>, vector<1x1x8x16xf32>,
    %c3_226 = arith.constant 3 : index
    %c1_227 = arith.constant 1 : index
    %243 = vector.load %arg5[%c3_226, %c1_227] : memref<14x128xf32, #tpu.memory_space<vmem>>, vector<8x16xf32>
    %cst_228 = arith.constant 2.000000e+00 : f32
    %244 = vector.broadcast %cst_228 : f32 to vector<8x16xf32>
    %245 = arith.mulf %244, %22 : vector<8x16xf32>
    %246 = arith.subf %243, %245 : vector<8x16xf32>
    %c3_229 = arith.constant 3 : index
    %c5 = arith.constant 5 : index
    %247 = vector.load %arg5[%c3_229, %c5] : memref<14x128xf32, #tpu.memory_space<vmem>>, vector<8x16xf32>
    %248 = arith.addf %246, %247 : vector<8x16xf32>
    %c1_230 = arith.constant 1 : index
    %c3_231 = arith.constant 3 : index
    %249 = vector.load %arg5[%c1_230, %c3_231] : memref<14x128xf32, #tpu.memory_space<vmem>>, vector<8x16xf32>
    %cst_232 = arith.constant 2.000000e+00 : f32
    %250 = vector.broadcast %cst_232 : f32 to vector<8x16xf32>
    %251 = arith.mulf %250, %22 : vector<8x16xf32>
    %252 = arith.subf %249, %251 : vector<8x16xf32>
    %c5_233 = arith.constant 5 : index
    %c3_234 = arith.constant 3 : index
    %253 = vector.load %arg5[%c5_233, %c3_234] : memref<14x128xf32, #tpu.memory_space<vmem>>, vector<8x16xf32>
    %254 = arith.addf %252, %253 : vector<8x16xf32>
    %c1_235 = arith.constant 1 : index
    %c1_236 = arith.constant 1 : index
    %255 = vector.load %arg5[%c1_235, %c1_236] : memref<14x128xf32, #tpu.memory_space<vmem>>, vector<8x16xf32>
    %c1_237 = arith.constant 1 : index
    %c5_238 = arith.constant 5 : index
    %256 = vector.load %arg5[%c1_237, %c5_238] : memref<14x128xf32, #tpu.memory_space<vmem>>, vector<8x16xf32>
    %257 = arith.subf %255, %256 : vector<8x16xf32>
    %c5_239 = arith.constant 5 : index
    %c1_240 = arith.constant 1 : index
    %258 = vector.load %arg5[%c5_239, %c1_240] : memref<14x128xf32, #tpu.memory_space<vmem>>, vector<8x16xf32>
    %259 = arith.subf %257, %258 : vector<8x16xf32>
    %c5_241 = arith.constant 5 : index
    %c5_242 = arith.constant 5 : index
    %260 = vector.load %arg5[%c5_241, %c5_242] : memref<14x128xf32, #tpu.memory_space<vmem>>, vector<8x16xf32>
    %261 = arith.addf %259, %260 : vector<8x16xf32>
    %cst_243 = arith.constant 0.000000e+00 : f32
    %cst_244 = arith.constant 1.000000e+00 : f32
    %262 = vector.broadcast %cst_243 : f32 to vector<8x16xf32>
    %263 = arith.maximumf %262, %248 : vector<8x16xf32>
    %264 = vector.broadcast %cst_244 : f32 to vector<8x16xf32>
    %265 = arith.minimumf %264, %263 : vector<8x16xf32>
    %c0_245 = arith.constant 0 : index
    %c3_246 = arith.constant 3 : index
    %c0_247 = arith.constant 0 : index
    %c0_248 = arith.constant 0 : index
    %266 = vector.load %arg3[%c0_245, %c3_246, %c0_247, %c0_248] : memref<1x12x8x16xf32, #tpu.memory_space<vmem>>, vector<1x1x8x16xf32>
    %267 = vector.shape_cast %266 : vector<1x1x8x16xf32> to vector<8x16xf32>
    %268 = vector.shape_cast %265 : vector<8x16xf32> to vector<1x1x8x16xf32>
    tpu.vector_store %arg3[%c0_245, %c3_246, %c0_247, %c0_248], %268 {strides = array<i32>} : memref<1x12x8x16xf32, #tpu.memory_space<vmem>>, vector<1x1x8x16xf32>,
    %cst_249 = arith.constant 0.000000e+00 : f32
    %cst_250 = arith.constant 1.000000e+00 : f32
    %269 = vector.broadcast %cst_249 : f32 to vector<8x16xf32>
    %270 = arith.maximumf %269, %254 : vector<8x16xf32>
    %271 = vector.broadcast %cst_250 : f32 to vector<8x16xf32>
    %272 = arith.minimumf %271, %270 : vector<8x16xf32>
    %c0_251 = arith.constant 0 : index
    %c4_252 = arith.constant 4 : index
    %c0_253 = arith.constant 0 : index
    %c0_254 = arith.constant 0 : index
    %273 = vector.load %arg3[%c0_251, %c4_252, %c0_253, %c0_254] : memref<1x12x8x16xf32, #tpu.memory_space<vmem>>, vector<1x1x8x16xf32>
    %274 = vector.shape_cast %273 : vector<1x1x8x16xf32> to vector<8x16xf32>
    %275 = vector.shape_cast %272 : vector<8x16xf32> to vector<1x1x8x16xf32>
    tpu.vector_store %arg3[%c0_251, %c4_252, %c0_253, %c0_254], %275 {strides = array<i32>} : memref<1x12x8x16xf32, #tpu.memory_space<vmem>>, vector<1x1x8x16xf32>,
    %cst_255 = arith.constant 0.000000e+00 : f32
    %cst_256 = arith.constant 1.000000e+00 : f32
    %276 = vector.broadcast %cst_255 : f32 to vector<8x16xf32>
    %277 = arith.maximumf %276, %261 : vector<8x16xf32>
    %278 = vector.broadcast %cst_256 : f32 to vector<8x16xf32>
    %279 = arith.minimumf %278, %277 : vector<8x16xf32>
    %c0_257 = arith.constant 0 : index
    %c5_258 = arith.constant 5 : index
    %c0_259 = arith.constant 0 : index
    %c0_260 = arith.constant 0 : index
    %280 = vector.load %arg3[%c0_257, %c5_258, %c0_259, %c0_260] : memref<1x12x8x16xf32, #tpu.memory_space<vmem>>, vector<1x1x8x16xf32>
    %281 = vector.shape_cast %280 : vector<1x1x8x16xf32> to vector<8x16xf32>
    %282 = vector.shape_cast %279 : vector<8x16xf32> to vector<1x1x8x16xf32>
    tpu.vector_store %arg3[%c0_257, %c5_258, %c0_259, %c0_260], %282 {strides = array<i32>} : memref<1x12x8x16xf32, #tpu.memory_space<vmem>>, vector<1x1x8x16xf32>,
    %c0_261 = arith.constant 0 : index
    %c0_262 = arith.constant 0 : index
    %c3_263 = arith.constant 3 : index
    %c3_264 = arith.constant 3 : index
    %283 = vector.load %arg4[%c0_261, %c0_262, %c3_263, %c3_264] : memref<1x4x14x128xf32, #tpu.memory_space<vmem>>, vector<1x1x8x16xf32>
    %284 = vector.shape_cast %283 : vector<1x1x8x16xf32> to vector<8x16xf32>
    %c0_265 = arith.constant 0 : index
    %c0_266 = arith.constant 0 : index
    %c3_267 = arith.constant 3 : index
    %c1_268 = arith.constant 1 : index
    %285 = vector.load %arg4[%c0_265, %c0_266, %c3_267, %c1_268] : memref<1x4x14x128xf32, #tpu.memory_space<vmem>>, vector<1x1x8x16xf32>
    %286 = vector.shape_cast %285 : vector<1x1x8x16xf32> to vector<8x16xf32>
    %cst_269 = arith.constant 2.000000e+00 : f32
    %287 = vector.broadcast %cst_269 : f32 to vector<8x16xf32>
    %288 = arith.mulf %287, %284 : vector<8x16xf32>
    %289 = arith.subf %286, %288 : vector<8x16xf32>
    %c0_270 = arith.constant 0 : index
    %c0_271 = arith.constant 0 : index
    %c3_272 = arith.constant 3 : index
    %c5_273 = arith.constant 5 : index
    %290 = vector.load %arg4[%c0_270, %c0_271, %c3_272, %c5_273] : memref<1x4x14x128xf32, #tpu.memory_space<vmem>>, vector<1x1x8x16xf32>
    %291 = vector.shape_cast %290 : vector<1x1x8x16xf32> to vector<8x16xf32>
    %292 = arith.addf %289, %291 : vector<8x16xf32>
    %c0_274 = arith.constant 0 : index
    %c0_275 = arith.constant 0 : index
    %c1_276 = arith.constant 1 : index
    %c3_277 = arith.constant 3 : index
    %293 = vector.load %arg4[%c0_274, %c0_275, %c1_276, %c3_277] : memref<1x4x14x128xf32, #tpu.memory_space<vmem>>, vector<1x1x8x16xf32>
    %294 = vector.shape_cast %293 : vector<1x1x8x16xf32> to vector<8x16xf32>
    %cst_278 = arith.constant 2.000000e+00 : f32
    %295 = vector.broadcast %cst_278 : f32 to vector<8x16xf32>
    %296 = arith.mulf %295, %284 : vector<8x16xf32>
    %297 = arith.subf %294, %296 : vector<8x16xf32>
    %c0_279 = arith.constant 0 : index
    %c0_280 = arith.constant 0 : index
    %c5_281 = arith.constant 5 : index
    %c3_282 = arith.constant 3 : index
    %298 = vector.load %arg4[%c0_279, %c0_280, %c5_281, %c3_282] : memref<1x4x14x128xf32, #tpu.memory_space<vmem>>, vector<1x1x8x16xf32>
    %299 = vector.shape_cast %298 : vector<1x1x8x16xf32> to vector<8x16xf32>
    %300 = arith.addf %297, %299 : vector<8x16xf32>
    %c0_283 = arith.constant 0 : index
    %c0_284 = arith.constant 0 : index
    %c1_285 = arith.constant 1 : index
    %c1_286 = arith.constant 1 : index
    %301 = vector.load %arg4[%c0_283, %c0_284, %c1_285, %c1_286] : memref<1x4x14x128xf32, #tpu.memory_space<vmem>>, vector<1x1x8x16xf32>
    %302 = vector.shape_cast %301 : vector<1x1x8x16xf32> to vector<8x16xf32>
    %c0_287 = arith.constant 0 : index
    %c0_288 = arith.constant 0 : index
    %c1_289 = arith.constant 1 : index
    %c5_290 = arith.constant 5 : index
    %303 = vector.load %arg4[%c0_287, %c0_288, %c1_289, %c5_290] : memref<1x4x14x128xf32, #tpu.memory_space<vmem>>, vector<1x1x8x16xf32>
    %304 = vector.shape_cast %303 : vector<1x1x8x16xf32> to vector<8x16xf32>
    %305 = arith.subf %302, %304 : vector<8x16xf32>
    %c0_291 = arith.constant 0 : index
    %c0_292 = arith.constant 0 : index
    %c5_293 = arith.constant 5 : index
    %c1_294 = arith.constant 1 : index
    %306 = vector.load %arg4[%c0_291, %c0_292, %c5_293, %c1_294] : memref<1x4x14x128xf32, #tpu.memory_space<vmem>>, vector<1x1x8x16xf32>
    %307 = vector.shape_cast %306 : vector<1x1x8x16xf32> to vector<8x16xf32>
    %308 = arith.subf %305, %307 : vector<8x16xf32>
    %c0_295 = arith.constant 0 : index
    %c0_296 = arith.constant 0 : index
    %c5_297 = arith.constant 5 : index
    %c5_298 = arith.constant 5 : index
    %309 = vector.load %arg4[%c0_295, %c0_296, %c5_297, %c5_298] : memref<1x4x14x128xf32, #tpu.memory_space<vmem>>, vector<1x1x8x16xf32>
    %310 = vector.shape_cast %309 : vector<1x1x8x16xf32> to vector<8x16xf32>
    %311 = arith.addf %308, %310 : vector<8x16xf32>
    %312 = arith.subf %292, %300 : vector<8x16xf32>
    %313 = arith.addf %292, %300 : vector<8x16xf32>
    %314 = arith.mulf %312, %312 : vector<8x16xf32>
    %315 = arith.mulf %311, %311 : vector<8x16xf32>
    %cst_299 = arith.constant 4.000000e+00 : f32
    %316 = vector.broadcast %cst_299 : f32 to vector<8x16xf32>
    %317 = arith.mulf %316, %315 : vector<8x16xf32>
    %318 = arith.addf %314, %317 : vector<8x16xf32>
    %cst_300 = arith.constant 1.53787009E-12 : f32
    %319 = vector.broadcast %cst_300 : f32 to vector<8x16xf32>
    %320 = arith.addf %318, %319 : vector<8x16xf32>
    %321 = math.sqrt %320 : vector<8x16xf32>
    %322 = arith.addf %313, %321 : vector<8x16xf32>
    %cst_301 = arith.constant 5.000000e-01 : f32
    %323 = vector.broadcast %cst_301 : f32 to vector<8x16xf32>
    %324 = arith.mulf %323, %322 : vector<8x16xf32>
    %c0_302 = arith.constant 0 : index
    %c1_303 = arith.constant 1 : index
    %c3_304 = arith.constant 3 : index
    %c3_305 = arith.constant 3 : index
    %325 = vector.load %arg4[%c0_302, %c1_303, %c3_304, %c3_305] : memref<1x4x14x128xf32, #tpu.memory_space<vmem>>, vector<1x1x8x16xf32>
    %326 = vector.shape_cast %325 : vector<1x1x8x16xf32> to vector<8x16xf32>
    %c0_306 = arith.constant 0 : index
    %c1_307 = arith.constant 1 : index
    %c3_308 = arith.constant 3 : index
    %c1_309 = arith.constant 1 : index
    %327 = vector.load %arg4[%c0_306, %c1_307, %c3_308, %c1_309] : memref<1x4x14x128xf32, #tpu.memory_space<vmem>>, vector<1x1x8x16xf32>
    %328 = vector.shape_cast %327 : vector<1x1x8x16xf32> to vector<8x16xf32>
    %cst_310 = arith.constant 2.000000e+00 : f32
    %329 = vector.broadcast %cst_310 : f32 to vector<8x16xf32>
    %330 = arith.mulf %329, %326 : vector<8x16xf32>
    %331 = arith.subf %328, %330 : vector<8x16xf32>
    %c0_311 = arith.constant 0 : index
    %c1_312 = arith.constant 1 : index
    %c3_313 = arith.constant 3 : index
    %c5_314 = arith.constant 5 : index
    %332 = vector.load %arg4[%c0_311, %c1_312, %c3_313, %c5_314] : memref<1x4x14x128xf32, #tpu.memory_space<vmem>>, vector<1x1x8x16xf32>
    %333 = vector.shape_cast %332 : vector<1x1x8x16xf32> to vector<8x16xf32>
    %334 = arith.addf %331, %333 : vector<8x16xf32>
    %c0_315 = arith.constant 0 : index
    %c1_316 = arith.constant 1 : index
    %c1_317 = arith.constant 1 : index
    %c3_318 = arith.constant 3 : index
    %335 = vector.load %arg4[%c0_315, %c1_316, %c1_317, %c3_318] : memref<1x4x14x128xf32, #tpu.memory_space<vmem>>, vector<1x1x8x16xf32>
    %336 = vector.shape_cast %335 : vector<1x1x8x16xf32> to vector<8x16xf32>
    %cst_319 = arith.constant 2.000000e+00 : f32
    %337 = vector.broadcast %cst_319 : f32 to vector<8x16xf32>
    %338 = arith.mulf %337, %326 : vector<8x16xf32>
    %339 = arith.subf %336, %338 : vector<8x16xf32>
    %c0_320 = arith.constant 0 : index
    %c1_321 = arith.constant 1 : index
    %c5_322 = arith.constant 5 : index
    %c3_323 = arith.constant 3 : index
    %340 = vector.load %arg4[%c0_320, %c1_321, %c5_322, %c3_323] : memref<1x4x14x128xf32, #tpu.memory_space<vmem>>, vector<1x1x8x16xf32>
    %341 = vector.shape_cast %340 : vector<1x1x8x16xf32> to vector<8x16xf32>
    %342 = arith.addf %339, %341 : vector<8x16xf32>
    %c0_324 = arith.constant 0 : index
    %c1_325 = arith.constant 1 : index
    %c1_326 = arith.constant 1 : index
    %c1_327 = arith.constant 1 : index
    %343 = vector.load %arg4[%c0_324, %c1_325, %c1_326, %c1_327] : memref<1x4x14x128xf32, #tpu.memory_space<vmem>>, vector<1x1x8x16xf32>
    %344 = vector.shape_cast %343 : vector<1x1x8x16xf32> to vector<8x16xf32>
    %c0_328 = arith.constant 0 : index
    %c1_329 = arith.constant 1 : index
    %c1_330 = arith.constant 1 : index
    %c5_331 = arith.constant 5 : index
    %345 = vector.load %arg4[%c0_328, %c1_329, %c1_330, %c5_331] : memref<1x4x14x128xf32, #tpu.memory_space<vmem>>, vector<1x1x8x16xf32>
    %346 = vector.shape_cast %345 : vector<1x1x8x16xf32> to vector<8x16xf32>
    %347 = arith.subf %344, %346 : vector<8x16xf32>
    %c0_332 = arith.constant 0 : index
    %c1_333 = arith.constant 1 : index
    %c5_334 = arith.constant 5 : index
    %c1_335 = arith.constant 1 : index
    %348 = vector.load %arg4[%c0_332, %c1_333, %c5_334, %c1_335] : memref<1x4x14x128xf32, #tpu.memory_space<vmem>>, vector<1x1x8x16xf32>
    %349 = vector.shape_cast %348 : vector<1x1x8x16xf32> to vector<8x16xf32>
    %350 = arith.subf %347, %349 : vector<8x16xf32>
    %c0_336 = arith.constant 0 : index
    %c1_337 = arith.constant 1 : index
    %c5_338 = arith.constant 5 : index
    %c5_339 = arith.constant 5 : index
    %351 = vector.load %arg4[%c0_336, %c1_337, %c5_338, %c5_339] : memref<1x4x14x128xf32, #tpu.memory_space<vmem>>, vector<1x1x8x16xf32>
    %352 = vector.shape_cast %351 : vector<1x1x8x16xf32> to vector<8x16xf32>
    %353 = arith.addf %350, %352 : vector<8x16xf32>
    %354 = arith.subf %334, %342 : vector<8x16xf32>
    %355 = arith.addf %334, %342 : vector<8x16xf32>
    %356 = arith.mulf %354, %354 : vector<8x16xf32>
    %357 = arith.mulf %353, %353 : vector<8x16xf32>
    %cst_340 = arith.constant 4.000000e+00 : f32
    %358 = vector.broadcast %cst_340 : f32 to vector<8x16xf32>
    %359 = arith.mulf %358, %357 : vector<8x16xf32>
    %360 = arith.addf %356, %359 : vector<8x16xf32>
    %cst_341 = arith.constant 1.53787009E-12 : f32
    %361 = vector.broadcast %cst_341 : f32 to vector<8x16xf32>
    %362 = arith.addf %360, %361 : vector<8x16xf32>
    %363 = math.sqrt %362 : vector<8x16xf32>
    %364 = arith.addf %355, %363 : vector<8x16xf32>
    %cst_342 = arith.constant 5.000000e-01 : f32
    %365 = vector.broadcast %cst_342 : f32 to vector<8x16xf32>
    %366 = arith.mulf %365, %364 : vector<8x16xf32>
    %367 = arith.addf %324, %366 : vector<8x16xf32>
    %c0_343 = arith.constant 0 : index
    %c2_344 = arith.constant 2 : index
    %c3_345 = arith.constant 3 : index
    %c3_346 = arith.constant 3 : index
    %368 = vector.load %arg4[%c0_343, %c2_344, %c3_345, %c3_346] : memref<1x4x14x128xf32, #tpu.memory_space<vmem>>, vector<1x1x8x16xf32>
    %369 = vector.shape_cast %368 : vector<1x1x8x16xf32> to vector<8x16xf32>
    %c0_347 = arith.constant 0 : index
    %c2_348 = arith.constant 2 : index
    %c3_349 = arith.constant 3 : index
    %c1_350 = arith.constant 1 : index
    %370 = vector.load %arg4[%c0_347, %c2_348, %c3_349, %c1_350] : memref<1x4x14x128xf32, #tpu.memory_space<vmem>>, vector<1x1x8x16xf32>
    %371 = vector.shape_cast %370 : vector<1x1x8x16xf32> to vector<8x16xf32>
    %cst_351 = arith.constant 2.000000e+00 : f32
    %372 = vector.broadcast %cst_351 : f32 to vector<8x16xf32>
    %373 = arith.mulf %372, %369 : vector<8x16xf32>
    %374 = arith.subf %371, %373 : vector<8x16xf32>
    %c0_352 = arith.constant 0 : index
    %c2_353 = arith.constant 2 : index
    %c3_354 = arith.constant 3 : index
    %c5_355 = arith.constant 5 : index
    %375 = vector.load %arg4[%c0_352, %c2_353, %c3_354, %c5_355] : memref<1x4x14x128xf32, #tpu.memory_space<vmem>>, vector<1x1x8x16xf32>
    %376 = vector.shape_cast %375 : vector<1x1x8x16xf32> to vector<8x16xf32>
    %377 = arith.addf %374, %376 : vector<8x16xf32>
    %c0_356 = arith.constant 0 : index
    %c2_357 = arith.constant 2 : index
    %c1_358 = arith.constant 1 : index
    %c3_359 = arith.constant 3 : index
    %378 = vector.load %arg4[%c0_356, %c2_357, %c1_358, %c3_359] : memref<1x4x14x128xf32, #tpu.memory_space<vmem>>, vector<1x1x8x16xf32>
    %379 = vector.shape_cast %378 : vector<1x1x8x16xf32> to vector<8x16xf32>
    %cst_360 = arith.constant 2.000000e+00 : f32
    %380 = vector.broadcast %cst_360 : f32 to vector<8x16xf32>
    %381 = arith.mulf %380, %369 : vector<8x16xf32>
    %382 = arith.subf %379, %381 : vector<8x16xf32>
    %c0_361 = arith.constant 0 : index
    %c2_362 = arith.constant 2 : index
    %c5_363 = arith.constant 5 : index
    %c3_364 = arith.constant 3 : index
    %383 = vector.load %arg4[%c0_361, %c2_362, %c5_363, %c3_364] : memref<1x4x14x128xf32, #tpu.memory_space<vmem>>, vector<1x1x8x16xf32>
    %384 = vector.shape_cast %383 : vector<1x1x8x16xf32> to vector<8x16xf32>
    %385 = arith.addf %382, %384 : vector<8x16xf32>
    %c0_365 = arith.constant 0 : index
    %c2_366 = arith.constant 2 : index
    %c1_367 = arith.constant 1 : index
    %c1_368 = arith.constant 1 : index
    %386 = vector.load %arg4[%c0_365, %c2_366, %c1_367, %c1_368] : memref<1x4x14x128xf32, #tpu.memory_space<vmem>>, vector<1x1x8x16xf32>
    %387 = vector.shape_cast %386 : vector<1x1x8x16xf32> to vector<8x16xf32>
    %c0_369 = arith.constant 0 : index
    %c2_370 = arith.constant 2 : index
    %c1_371 = arith.constant 1 : index
    %c5_372 = arith.constant 5 : index
    %388 = vector.load %arg4[%c0_369, %c2_370, %c1_371, %c5_372] : memref<1x4x14x128xf32, #tpu.memory_space<vmem>>, vector<1x1x8x16xf32>
    %389 = vector.shape_cast %388 : vector<1x1x8x16xf32> to vector<8x16xf32>
    %390 = arith.subf %387, %389 : vector<8x16xf32>
    %c0_373 = arith.constant 0 : index
    %c2_374 = arith.constant 2 : index
    %c5_375 = arith.constant 5 : index
    %c1_376 = arith.constant 1 : index
    %391 = vector.load %arg4[%c0_373, %c2_374, %c5_375, %c1_376] : memref<1x4x14x128xf32, #tpu.memory_space<vmem>>, vector<1x1x8x16xf32>
    %392 = vector.shape_cast %391 : vector<1x1x8x16xf32> to vector<8x16xf32>
    %393 = arith.subf %390, %392 : vector<8x16xf32>
    %c0_377 = arith.constant 0 : index
    %c2_378 = arith.constant 2 : index
    %c5_379 = arith.constant 5 : index
    %c5_380 = arith.constant 5 : index
    %394 = vector.load %arg4[%c0_377, %c2_378, %c5_379, %c5_380] : memref<1x4x14x128xf32, #tpu.memory_space<vmem>>, vector<1x1x8x16xf32>
    %395 = vector.shape_cast %394 : vector<1x1x8x16xf32> to vector<8x16xf32>
    %396 = arith.addf %393, %395 : vector<8x16xf32>
    %397 = arith.subf %377, %385 : vector<8x16xf32>
    %398 = arith.addf %377, %385 : vector<8x16xf32>
    %399 = arith.mulf %397, %397 : vector<8x16xf32>
    %400 = arith.mulf %396, %396 : vector<8x16xf32>
    %cst_381 = arith.constant 4.000000e+00 : f32
    %401 = vector.broadcast %cst_381 : f32 to vector<8x16xf32>
    %402 = arith.mulf %401, %400 : vector<8x16xf32>
    %403 = arith.addf %399, %402 : vector<8x16xf32>
    %cst_382 = arith.constant 1.53787009E-12 : f32
    %404 = vector.broadcast %cst_382 : f32 to vector<8x16xf32>
    %405 = arith.addf %403, %404 : vector<8x16xf32>
    %406 = math.sqrt %405 : vector<8x16xf32>
    %407 = arith.addf %398, %406 : vector<8x16xf32>
    %cst_383 = arith.constant 5.000000e-01 : f32
    %408 = vector.broadcast %cst_383 : f32 to vector<8x16xf32>
    %409 = arith.mulf %408, %407 : vector<8x16xf32>
    %410 = arith.addf %367, %409 : vector<8x16xf32>
    %c0_384 = arith.constant 0 : index
    %c3_385 = arith.constant 3 : index
    %c3_386 = arith.constant 3 : index
    %c3_387 = arith.constant 3 : index
    %411 = vector.load %arg4[%c0_384, %c3_385, %c3_386, %c3_387] : memref<1x4x14x128xf32, #tpu.memory_space<vmem>>, vector<1x1x8x16xf32>
    %412 = vector.shape_cast %411 : vector<1x1x8x16xf32> to vector<8x16xf32>
    %c0_388 = arith.constant 0 : index
    %c3_389 = arith.constant 3 : index
    %c3_390 = arith.constant 3 : index
    %c1_391 = arith.constant 1 : index
    %413 = vector.load %arg4[%c0_388, %c3_389, %c3_390, %c1_391] : memref<1x4x14x128xf32, #tpu.memory_space<vmem>>, vector<1x1x8x16xf32>
    %414 = vector.shape_cast %413 : vector<1x1x8x16xf32> to vector<8x16xf32>
    %cst_392 = arith.constant 2.000000e+00 : f32
    %415 = vector.broadcast %cst_392 : f32 to vector<8x16xf32>
    %416 = arith.mulf %415, %412 : vector<8x16xf32>
    %417 = arith.subf %414, %416 : vector<8x16xf32>
    %c0_393 = arith.constant 0 : index
    %c3_394 = arith.constant 3 : index
    %c3_395 = arith.constant 3 : index
    %c5_396 = arith.constant 5 : index
    %418 = vector.load %arg4[%c0_393, %c3_394, %c3_395, %c5_396] : memref<1x4x14x128xf32, #tpu.memory_space<vmem>>, vector<1x1x8x16xf32>
    %419 = vector.shape_cast %418 : vector<1x1x8x16xf32> to vector<8x16xf32>
    %420 = arith.addf %417, %419 : vector<8x16xf32>
    %c0_397 = arith.constant 0 : index
    %c3_398 = arith.constant 3 : index
    %c1_399 = arith.constant 1 : index
    %c3_400 = arith.constant 3 : index
    %421 = vector.load %arg4[%c0_397, %c3_398, %c1_399, %c3_400] : memref<1x4x14x128xf32, #tpu.memory_space<vmem>>, vector<1x1x8x16xf32>
    %422 = vector.shape_cast %421 : vector<1x1x8x16xf32> to vector<8x16xf32>
    %cst_401 = arith.constant 2.000000e+00 : f32
    %423 = vector.broadcast %cst_401 : f32 to vector<8x16xf32>
    %424 = arith.mulf %423, %412 : vector<8x16xf32>
    %425 = arith.subf %422, %424 : vector<8x16xf32>
    %c0_402 = arith.constant 0 : index
    %c3_403 = arith.constant 3 : index
    %c5_404 = arith.constant 5 : index
    %c3_405 = arith.constant 3 : index
    %426 = vector.load %arg4[%c0_402, %c3_403, %c5_404, %c3_405] : memref<1x4x14x128xf32, #tpu.memory_space<vmem>>, vector<1x1x8x16xf32>
    %427 = vector.shape_cast %426 : vector<1x1x8x16xf32> to vector<8x16xf32>
    %428 = arith.addf %425, %427 : vector<8x16xf32>
    %c0_406 = arith.constant 0 : index
    %c3_407 = arith.constant 3 : index
    %c1_408 = arith.constant 1 : index
    %c1_409 = arith.constant 1 : index
    %429 = vector.load %arg4[%c0_406, %c3_407, %c1_408, %c1_409] : memref<1x4x14x128xf32, #tpu.memory_space<vmem>>, vector<1x1x8x16xf32>
    %430 = vector.shape_cast %429 : vector<1x1x8x16xf32> to vector<8x16xf32>
    %c0_410 = arith.constant 0 : index
    %c3_411 = arith.constant 3 : index
    %c1_412 = arith.constant 1 : index
    %c5_413 = arith.constant 5 : index
    %431 = vector.load %arg4[%c0_410, %c3_411, %c1_412, %c5_413] : memref<1x4x14x128xf32, #tpu.memory_space<vmem>>, vector<1x1x8x16xf32>
    %432 = vector.shape_cast %431 : vector<1x1x8x16xf32> to vector<8x16xf32>
    %433 = arith.subf %430, %432 : vector<8x16xf32>
    %c0_414 = arith.constant 0 : index
    %c3_415 = arith.constant 3 : index
    %c5_416 = arith.constant 5 : index
    %c1_417 = arith.constant 1 : index
    %434 = vector.load %arg4[%c0_414, %c3_415, %c5_416, %c1_417] : memref<1x4x14x128xf32, #tpu.memory_space<vmem>>, vector<1x1x8x16xf32>
    %435 = vector.shape_cast %434 : vector<1x1x8x16xf32> to vector<8x16xf32>
    %436 = arith.subf %433, %435 : vector<8x16xf32>
    %c0_418 = arith.constant 0 : index
    %c3_419 = arith.constant 3 : index
    %c5_420 = arith.constant 5 : index
    %c5_421 = arith.constant 5 : index
    %437 = vector.load %arg4[%c0_418, %c3_419, %c5_420, %c5_421] : memref<1x4x14x128xf32, #tpu.memory_space<vmem>>, vector<1x1x8x16xf32>
    %438 = vector.shape_cast %437 : vector<1x1x8x16xf32> to vector<8x16xf32>
    %439 = arith.addf %436, %438 : vector<8x16xf32>
    %440 = arith.subf %420, %428 : vector<8x16xf32>
    %441 = arith.addf %420, %428 : vector<8x16xf32>
    %442 = arith.mulf %440, %440 : vector<8x16xf32>
    %443 = arith.mulf %439, %439 : vector<8x16xf32>
    %cst_422 = arith.constant 4.000000e+00 : f32
    %444 = vector.broadcast %cst_422 : f32 to vector<8x16xf32>
    %445 = arith.mulf %444, %443 : vector<8x16xf32>
    %446 = arith.addf %442, %445 : vector<8x16xf32>
    %cst_423 = arith.constant 1.53787009E-12 : f32
    %447 = vector.broadcast %cst_423 : f32 to vector<8x16xf32>
    %448 = arith.addf %446, %447 : vector<8x16xf32>
    %449 = math.sqrt %448 : vector<8x16xf32>
    %450 = arith.addf %441, %449 : vector<8x16xf32>
    %cst_424 = arith.constant 5.000000e-01 : f32
    %451 = vector.broadcast %cst_424 : f32 to vector<8x16xf32>
    %452 = arith.mulf %451, %450 : vector<8x16xf32>
    %453 = arith.addf %410, %452 : vector<8x16xf32>
    %cst_425 = arith.constant 2.500000e-01 : f32
    %454 = vector.broadcast %cst_425 : f32 to vector<8x16xf32>
    %455 = arith.mulf %453, %454 : vector<8x16xf32>
    %cst_426 = arith.constant 0.000000e+00 : f32
    %cst_427 = arith.constant 1.000000e+00 : f32
    %456 = vector.broadcast %cst_426 : f32 to vector<8x16xf32>
    %457 = arith.maximumf %456, %455 : vector<8x16xf32>
    %458 = vector.broadcast %cst_427 : f32 to vector<8x16xf32>
    %459 = arith.minimumf %458, %457 : vector<8x16xf32>
    %c0_428 = arith.constant 0 : index
    %c10 = arith.constant 10 : index
    %c0_429 = arith.constant 0 : index
    %c0_430 = arith.constant 0 : index
    %460 = vector.load %arg3[%c0_428, %c10, %c0_429, %c0_430] : memref<1x12x8x16xf32, #tpu.memory_space<vmem>>, vector<1x1x8x16xf32>
    %461 = vector.shape_cast %460 : vector<1x1x8x16xf32> to vector<8x16xf32>
    %462 = vector.shape_cast %459 : vector<8x16xf32> to vector<1x1x8x16xf32>
    tpu.vector_store %arg3[%c0_428, %c10, %c0_429, %c0_430], %462 {strides = array<i32>} : memref<1x12x8x16xf32, #tpu.memory_space<vmem>>, vector<1x1x8x16xf32>,
    %c3_431 = arith.constant 3 : index
    %c0_432 = arith.constant 0 : index
    %463 = vector.load %arg5[%c3_431, %c0_432] : memref<14x128xf32, #tpu.memory_space<vmem>>, vector<8x16xf32>
    %cst_433 = arith.constant 2.000000e+00 : f32
    %464 = vector.broadcast %cst_433 : f32 to vector<8x16xf32>
    %465 = arith.mulf %464, %22 : vector<8x16xf32>
    %466 = arith.subf %463, %465 : vector<8x16xf32>
    %c3_434 = arith.constant 3 : index
    %c6 = arith.constant 6 : index
    %467 = vector.load %arg5[%c3_434, %c6] : memref<14x128xf32, #tpu.memory_space<vmem>>, vector<8x16xf32>
    %468 = arith.addf %466, %467 : vector<8x16xf32>
    %c0_435 = arith.constant 0 : index
    %c3_436 = arith.constant 3 : index
    %469 = vector.load %arg5[%c0_435, %c3_436] : memref<14x128xf32, #tpu.memory_space<vmem>>, vector<8x16xf32>
    %cst_437 = arith.constant 2.000000e+00 : f32
    %470 = vector.broadcast %cst_437 : f32 to vector<8x16xf32>
    %471 = arith.mulf %470, %22 : vector<8x16xf32>
    %472 = arith.subf %469, %471 : vector<8x16xf32>
    %c6_438 = arith.constant 6 : index
    %c3_439 = arith.constant 3 : index
    %473 = vector.load %arg5[%c6_438, %c3_439] : memref<14x128xf32, #tpu.memory_space<vmem>>, vector<8x16xf32>
    %474 = arith.addf %472, %473 : vector<8x16xf32>
    %c0_440 = arith.constant 0 : index
    %c0_441 = arith.constant 0 : index
    %475 = vector.load %arg5[%c0_440, %c0_441] : memref<14x128xf32, #tpu.memory_space<vmem>>, vector<8x16xf32>
    %c0_442 = arith.constant 0 : index
    %c6_443 = arith.constant 6 : index
    %476 = vector.load %arg5[%c0_442, %c6_443] : memref<14x128xf32, #tpu.memory_space<vmem>>, vector<8x16xf32>
    %477 = arith.subf %475, %476 : vector<8x16xf32>
    %c6_444 = arith.constant 6 : index
    %c0_445 = arith.constant 0 : index
    %478 = vector.load %arg5[%c6_444, %c0_445] : memref<14x128xf32, #tpu.memory_space<vmem>>, vector<8x16xf32>
    %479 = arith.subf %477, %478 : vector<8x16xf32>
    %c6_446 = arith.constant 6 : index
    %c6_447 = arith.constant 6 : index
    %480 = vector.load %arg5[%c6_446, %c6_447] : memref<14x128xf32, #tpu.memory_space<vmem>>, vector<8x16xf32>
    %481 = arith.addf %479, %480 : vector<8x16xf32>
    %cst_448 = arith.constant 0.000000e+00 : f32
    %cst_449 = arith.constant 1.000000e+00 : f32
    %482 = vector.broadcast %cst_448 : f32 to vector<8x16xf32>
    %483 = arith.maximumf %482, %468 : vector<8x16xf32>
    %484 = vector.broadcast %cst_449 : f32 to vector<8x16xf32>
    %485 = arith.minimumf %484, %483 : vector<8x16xf32>
    %c0_450 = arith.constant 0 : index
    %c6_451 = arith.constant 6 : index
    %c0_452 = arith.constant 0 : index
    %c0_453 = arith.constant 0 : index
    %486 = vector.load %arg3[%c0_450, %c6_451, %c0_452, %c0_453] : memref<1x12x8x16xf32, #tpu.memory_space<vmem>>, vector<1x1x8x16xf32>
    %487 = vector.shape_cast %486 : vector<1x1x8x16xf32> to vector<8x16xf32>
    %488 = vector.shape_cast %485 : vector<8x16xf32> to vector<1x1x8x16xf32>
    tpu.vector_store %arg3[%c0_450, %c6_451, %c0_452, %c0_453], %488 {strides = array<i32>} : memref<1x12x8x16xf32, #tpu.memory_space<vmem>>, vector<1x1x8x16xf32>,
    %cst_454 = arith.constant 0.000000e+00 : f32
    %cst_455 = arith.constant 1.000000e+00 : f32
    %489 = vector.broadcast %cst_454 : f32 to vector<8x16xf32>
    %490 = arith.maximumf %489, %474 : vector<8x16xf32>
    %491 = vector.broadcast %cst_455 : f32 to vector<8x16xf32>
    %492 = arith.minimumf %491, %490 : vector<8x16xf32>
    %c0_456 = arith.constant 0 : index
    %c7 = arith.constant 7 : index
    %c0_457 = arith.constant 0 : index
    %c0_458 = arith.constant 0 : index
    %493 = vector.load %arg3[%c0_456, %c7, %c0_457, %c0_458] : memref<1x12x8x16xf32, #tpu.memory_space<vmem>>, vector<1x1x8x16xf32>
    %494 = vector.shape_cast %493 : vector<1x1x8x16xf32> to vector<8x16xf32>
    %495 = vector.shape_cast %492 : vector<8x16xf32> to vector<1x1x8x16xf32>
    tpu.vector_store %arg3[%c0_456, %c7, %c0_457, %c0_458], %495 {strides = array<i32>} : memref<1x12x8x16xf32, #tpu.memory_space<vmem>>, vector<1x1x8x16xf32>,
    %cst_459 = arith.constant 0.000000e+00 : f32
    %cst_460 = arith.constant 1.000000e+00 : f32
    %496 = vector.broadcast %cst_459 : f32 to vector<8x16xf32>
    %497 = arith.maximumf %496, %481 : vector<8x16xf32>
    %498 = vector.broadcast %cst_460 : f32 to vector<8x16xf32>
    %499 = arith.minimumf %498, %497 : vector<8x16xf32>
    %c0_461 = arith.constant 0 : index
    %c8 = arith.constant 8 : index
    %c0_462 = arith.constant 0 : index
    %c0_463 = arith.constant 0 : index
    %500 = vector.load %arg3[%c0_461, %c8, %c0_462, %c0_463] : memref<1x12x8x16xf32, #tpu.memory_space<vmem>>, vector<1x1x8x16xf32>
    %501 = vector.shape_cast %500 : vector<1x1x8x16xf32> to vector<8x16xf32>
    %502 = vector.shape_cast %499 : vector<8x16xf32> to vector<1x1x8x16xf32>
    tpu.vector_store %arg3[%c0_461, %c8, %c0_462, %c0_463], %502 {strides = array<i32>} : memref<1x12x8x16xf32, #tpu.memory_space<vmem>>, vector<1x1x8x16xf32>,
    %c0_464 = arith.constant 0 : index
    %c0_465 = arith.constant 0 : index
    %c3_466 = arith.constant 3 : index
    %c3_467 = arith.constant 3 : index
    %503 = vector.load %arg4[%c0_464, %c0_465, %c3_466, %c3_467] : memref<1x4x14x128xf32, #tpu.memory_space<vmem>>, vector<1x1x8x16xf32>
    %504 = vector.shape_cast %503 : vector<1x1x8x16xf32> to vector<8x16xf32>
    %c0_468 = arith.constant 0 : index
    %c0_469 = arith.constant 0 : index
    %c3_470 = arith.constant 3 : index
    %c0_471 = arith.constant 0 : index
    %505 = vector.load %arg4[%c0_468, %c0_469, %c3_470, %c0_471] : memref<1x4x14x128xf32, #tpu.memory_space<vmem>>, vector<1x1x8x16xf32>
    %506 = vector.shape_cast %505 : vector<1x1x8x16xf32> to vector<8x16xf32>
    %cst_472 = arith.constant 2.000000e+00 : f32
    %507 = vector.broadcast %cst_472 : f32 to vector<8x16xf32>
    %508 = arith.mulf %507, %504 : vector<8x16xf32>
    %509 = arith.subf %506, %508 : vector<8x16xf32>
    %c0_473 = arith.constant 0 : index
    %c0_474 = arith.constant 0 : index
    %c3_475 = arith.constant 3 : index
    %c6_476 = arith.constant 6 : index
    %510 = vector.load %arg4[%c0_473, %c0_474, %c3_475, %c6_476] : memref<1x4x14x128xf32, #tpu.memory_space<vmem>>, vector<1x1x8x16xf32>
    %511 = vector.shape_cast %510 : vector<1x1x8x16xf32> to vector<8x16xf32>
    %512 = arith.addf %509, %511 : vector<8x16xf32>
    %c0_477 = arith.constant 0 : index
    %c0_478 = arith.constant 0 : index
    %c0_479 = arith.constant 0 : index
    %c3_480 = arith.constant 3 : index
    %513 = vector.load %arg4[%c0_477, %c0_478, %c0_479, %c3_480] : memref<1x4x14x128xf32, #tpu.memory_space<vmem>>, vector<1x1x8x16xf32>
    %514 = vector.shape_cast %513 : vector<1x1x8x16xf32> to vector<8x16xf32>
    %cst_481 = arith.constant 2.000000e+00 : f32
    %515 = vector.broadcast %cst_481 : f32 to vector<8x16xf32>
    %516 = arith.mulf %515, %504 : vector<8x16xf32>
    %517 = arith.subf %514, %516 : vector<8x16xf32>
    %c0_482 = arith.constant 0 : index
    %c0_483 = arith.constant 0 : index
    %c6_484 = arith.constant 6 : index
    %c3_485 = arith.constant 3 : index
    %518 = vector.load %arg4[%c0_482, %c0_483, %c6_484, %c3_485] : memref<1x4x14x128xf32, #tpu.memory_space<vmem>>, vector<1x1x8x16xf32>
    %519 = vector.shape_cast %518 : vector<1x1x8x16xf32> to vector<8x16xf32>
    %520 = arith.addf %517, %519 : vector<8x16xf32>
    %c0_486 = arith.constant 0 : index
    %c0_487 = arith.constant 0 : index
    %c0_488 = arith.constant 0 : index
    %c0_489 = arith.constant 0 : index
    %521 = vector.load %arg4[%c0_486, %c0_487, %c0_488, %c0_489] : memref<1x4x14x128xf32, #tpu.memory_space<vmem>>, vector<1x1x8x16xf32>
    %522 = vector.shape_cast %521 : vector<1x1x8x16xf32> to vector<8x16xf32>
    %c0_490 = arith.constant 0 : index
    %c0_491 = arith.constant 0 : index
    %c0_492 = arith.constant 0 : index
    %c6_493 = arith.constant 6 : index
    %523 = vector.load %arg4[%c0_490, %c0_491, %c0_492, %c6_493] : memref<1x4x14x128xf32, #tpu.memory_space<vmem>>, vector<1x1x8x16xf32>
    %524 = vector.shape_cast %523 : vector<1x1x8x16xf32> to vector<8x16xf32>
    %525 = arith.subf %522, %524 : vector<8x16xf32>
    %c0_494 = arith.constant 0 : index
    %c0_495 = arith.constant 0 : index
    %c6_496 = arith.constant 6 : index
    %c0_497 = arith.constant 0 : index
    %526 = vector.load %arg4[%c0_494, %c0_495, %c6_496, %c0_497] : memref<1x4x14x128xf32, #tpu.memory_space<vmem>>, vector<1x1x8x16xf32>
    %527 = vector.shape_cast %526 : vector<1x1x8x16xf32> to vector<8x16xf32>
    %528 = arith.subf %525, %527 : vector<8x16xf32>
    %c0_498 = arith.constant 0 : index
    %c0_499 = arith.constant 0 : index
    %c6_500 = arith.constant 6 : index
    %c6_501 = arith.constant 6 : index
    %529 = vector.load %arg4[%c0_498, %c0_499, %c6_500, %c6_501] : memref<1x4x14x128xf32, #tpu.memory_space<vmem>>, vector<1x1x8x16xf32>
    %530 = vector.shape_cast %529 : vector<1x1x8x16xf32> to vector<8x16xf32>
    %531 = arith.addf %528, %530 : vector<8x16xf32>
    %532 = arith.subf %512, %520 : vector<8x16xf32>
    %533 = arith.addf %512, %520 : vector<8x16xf32>
    %534 = arith.mulf %532, %532 : vector<8x16xf32>
    %535 = arith.mulf %531, %531 : vector<8x16xf32>
    %cst_502 = arith.constant 4.000000e+00 : f32
    %536 = vector.broadcast %cst_502 : f32 to vector<8x16xf32>
    %537 = arith.mulf %536, %535 : vector<8x16xf32>
    %538 = arith.addf %534, %537 : vector<8x16xf32>
    %cst_503 = arith.constant 1.53787009E-12 : f32
    %539 = vector.broadcast %cst_503 : f32 to vector<8x16xf32>
    %540 = arith.addf %538, %539 : vector<8x16xf32>
    %541 = math.sqrt %540 : vector<8x16xf32>
    %542 = arith.addf %533, %541 : vector<8x16xf32>
    %cst_504 = arith.constant 5.000000e-01 : f32
    %543 = vector.broadcast %cst_504 : f32 to vector<8x16xf32>
    %544 = arith.mulf %543, %542 : vector<8x16xf32>
    %c0_505 = arith.constant 0 : index
    %c1_506 = arith.constant 1 : index
    %c3_507 = arith.constant 3 : index
    %c3_508 = arith.constant 3 : index
    %545 = vector.load %arg4[%c0_505, %c1_506, %c3_507, %c3_508] : memref<1x4x14x128xf32, #tpu.memory_space<vmem>>, vector<1x1x8x16xf32>
    %546 = vector.shape_cast %545 : vector<1x1x8x16xf32> to vector<8x16xf32>
    %c0_509 = arith.constant 0 : index
    %c1_510 = arith.constant 1 : index
    %c3_511 = arith.constant 3 : index
    %c0_512 = arith.constant 0 : index
    %547 = vector.load %arg4[%c0_509, %c1_510, %c3_511, %c0_512] : memref<1x4x14x128xf32, #tpu.memory_space<vmem>>, vector<1x1x8x16xf32>
    %548 = vector.shape_cast %547 : vector<1x1x8x16xf32> to vector<8x16xf32>
    %cst_513 = arith.constant 2.000000e+00 : f32
    %549 = vector.broadcast %cst_513 : f32 to vector<8x16xf32>
    %550 = arith.mulf %549, %546 : vector<8x16xf32>
    %551 = arith.subf %548, %550 : vector<8x16xf32>
    %c0_514 = arith.constant 0 : index
    %c1_515 = arith.constant 1 : index
    %c3_516 = arith.constant 3 : index
    %c6_517 = arith.constant 6 : index
    %552 = vector.load %arg4[%c0_514, %c1_515, %c3_516, %c6_517] : memref<1x4x14x128xf32, #tpu.memory_space<vmem>>, vector<1x1x8x16xf32>
    %553 = vector.shape_cast %552 : vector<1x1x8x16xf32> to vector<8x16xf32>
    %554 = arith.addf %551, %553 : vector<8x16xf32>
    %c0_518 = arith.constant 0 : index
    %c1_519 = arith.constant 1 : index
    %c0_520 = arith.constant 0 : index
    %c3_521 = arith.constant 3 : index
    %555 = vector.load %arg4[%c0_518, %c1_519, %c0_520, %c3_521] : memref<1x4x14x128xf32, #tpu.memory_space<vmem>>, vector<1x1x8x16xf32>
    %556 = vector.shape_cast %555 : vector<1x1x8x16xf32> to vector<8x16xf32>
    %cst_522 = arith.constant 2.000000e+00 : f32
    %557 = vector.broadcast %cst_522 : f32 to vector<8x16xf32>
    %558 = arith.mulf %557, %546 : vector<8x16xf32>
    %559 = arith.subf %556, %558 : vector<8x16xf32>
    %c0_523 = arith.constant 0 : index
    %c1_524 = arith.constant 1 : index
    %c6_525 = arith.constant 6 : index
    %c3_526 = arith.constant 3 : index
    %560 = vector.load %arg4[%c0_523, %c1_524, %c6_525, %c3_526] : memref<1x4x14x128xf32, #tpu.memory_space<vmem>>, vector<1x1x8x16xf32>
    %561 = vector.shape_cast %560 : vector<1x1x8x16xf32> to vector<8x16xf32>
    %562 = arith.addf %559, %561 : vector<8x16xf32>
    %c0_527 = arith.constant 0 : index
    %c1_528 = arith.constant 1 : index
    %c0_529 = arith.constant 0 : index
    %c0_530 = arith.constant 0 : index
    %563 = vector.load %arg4[%c0_527, %c1_528, %c0_529, %c0_530] : memref<1x4x14x128xf32, #tpu.memory_space<vmem>>, vector<1x1x8x16xf32>
    %564 = vector.shape_cast %563 : vector<1x1x8x16xf32> to vector<8x16xf32>
    %c0_531 = arith.constant 0 : index
    %c1_532 = arith.constant 1 : index
    %c0_533 = arith.constant 0 : index
    %c6_534 = arith.constant 6 : index
    %565 = vector.load %arg4[%c0_531, %c1_532, %c0_533, %c6_534] : memref<1x4x14x128xf32, #tpu.memory_space<vmem>>, vector<1x1x8x16xf32>
    %566 = vector.shape_cast %565 : vector<1x1x8x16xf32> to vector<8x16xf32>
    %567 = arith.subf %564, %566 : vector<8x16xf32>
    %c0_535 = arith.constant 0 : index
    %c1_536 = arith.constant 1 : index
    %c6_537 = arith.constant 6 : index
    %c0_538 = arith.constant 0 : index
    %568 = vector.load %arg4[%c0_535, %c1_536, %c6_537, %c0_538] : memref<1x4x14x128xf32, #tpu.memory_space<vmem>>, vector<1x1x8x16xf32>
    %569 = vector.shape_cast %568 : vector<1x1x8x16xf32> to vector<8x16xf32>
    %570 = arith.subf %567, %569 : vector<8x16xf32>
    %c0_539 = arith.constant 0 : index
    %c1_540 = arith.constant 1 : index
    %c6_541 = arith.constant 6 : index
    %c6_542 = arith.constant 6 : index
    %571 = vector.load %arg4[%c0_539, %c1_540, %c6_541, %c6_542] : memref<1x4x14x128xf32, #tpu.memory_space<vmem>>, vector<1x1x8x16xf32>
    %572 = vector.shape_cast %571 : vector<1x1x8x16xf32> to vector<8x16xf32>
    %573 = arith.addf %570, %572 : vector<8x16xf32>
    %574 = arith.subf %554, %562 : vector<8x16xf32>
    %575 = arith.addf %554, %562 : vector<8x16xf32>
    %576 = arith.mulf %574, %574 : vector<8x16xf32>
    %577 = arith.mulf %573, %573 : vector<8x16xf32>
    %cst_543 = arith.constant 4.000000e+00 : f32
    %578 = vector.broadcast %cst_543 : f32 to vector<8x16xf32>
    %579 = arith.mulf %578, %577 : vector<8x16xf32>
    %580 = arith.addf %576, %579 : vector<8x16xf32>
    %cst_544 = arith.constant 1.53787009E-12 : f32
    %581 = vector.broadcast %cst_544 : f32 to vector<8x16xf32>
    %582 = arith.addf %580, %581 : vector<8x16xf32>
    %583 = math.sqrt %582 : vector<8x16xf32>
    %584 = arith.addf %575, %583 : vector<8x16xf32>
    %cst_545 = arith.constant 5.000000e-01 : f32
    %585 = vector.broadcast %cst_545 : f32 to vector<8x16xf32>
    %586 = arith.mulf %585, %584 : vector<8x16xf32>
    %587 = arith.addf %544, %586 : vector<8x16xf32>
    %c0_546 = arith.constant 0 : index
    %c2_547 = arith.constant 2 : index
    %c3_548 = arith.constant 3 : index
    %c3_549 = arith.constant 3 : index
    %588 = vector.load %arg4[%c0_546, %c2_547, %c3_548, %c3_549] : memref<1x4x14x128xf32, #tpu.memory_space<vmem>>, vector<1x1x8x16xf32>
    %589 = vector.shape_cast %588 : vector<1x1x8x16xf32> to vector<8x16xf32>
    %c0_550 = arith.constant 0 : index
    %c2_551 = arith.constant 2 : index
    %c3_552 = arith.constant 3 : index
    %c0_553 = arith.constant 0 : index
    %590 = vector.load %arg4[%c0_550, %c2_551, %c3_552, %c0_553] : memref<1x4x14x128xf32, #tpu.memory_space<vmem>>, vector<1x1x8x16xf32>
    %591 = vector.shape_cast %590 : vector<1x1x8x16xf32> to vector<8x16xf32>
    %cst_554 = arith.constant 2.000000e+00 : f32
    %592 = vector.broadcast %cst_554 : f32 to vector<8x16xf32>
    %593 = arith.mulf %592, %589 : vector<8x16xf32>
    %594 = arith.subf %591, %593 : vector<8x16xf32>
    %c0_555 = arith.constant 0 : index
    %c2_556 = arith.constant 2 : index
    %c3_557 = arith.constant 3 : index
    %c6_558 = arith.constant 6 : index
    %595 = vector.load %arg4[%c0_555, %c2_556, %c3_557, %c6_558] : memref<1x4x14x128xf32, #tpu.memory_space<vmem>>, vector<1x1x8x16xf32>
    %596 = vector.shape_cast %595 : vector<1x1x8x16xf32> to vector<8x16xf32>
    %597 = arith.addf %594, %596 : vector<8x16xf32>
    %c0_559 = arith.constant 0 : index
    %c2_560 = arith.constant 2 : index
    %c0_561 = arith.constant 0 : index
    %c3_562 = arith.constant 3 : index
    %598 = vector.load %arg4[%c0_559, %c2_560, %c0_561, %c3_562] : memref<1x4x14x128xf32, #tpu.memory_space<vmem>>, vector<1x1x8x16xf32>
    %599 = vector.shape_cast %598 : vector<1x1x8x16xf32> to vector<8x16xf32>
    %cst_563 = arith.constant 2.000000e+00 : f32
    %600 = vector.broadcast %cst_563 : f32 to vector<8x16xf32>
    %601 = arith.mulf %600, %589 : vector<8x16xf32>
    %602 = arith.subf %599, %601 : vector<8x16xf32>
    %c0_564 = arith.constant 0 : index
    %c2_565 = arith.constant 2 : index
    %c6_566 = arith.constant 6 : index
    %c3_567 = arith.constant 3 : index
    %603 = vector.load %arg4[%c0_564, %c2_565, %c6_566, %c3_567] : memref<1x4x14x128xf32, #tpu.memory_space<vmem>>, vector<1x1x8x16xf32>
    %604 = vector.shape_cast %603 : vector<1x1x8x16xf32> to vector<8x16xf32>
    %605 = arith.addf %602, %604 : vector<8x16xf32>
    %c0_568 = arith.constant 0 : index
    %c2_569 = arith.constant 2 : index
    %c0_570 = arith.constant 0 : index
    %c0_571 = arith.constant 0 : index
    %606 = vector.load %arg4[%c0_568, %c2_569, %c0_570, %c0_571] : memref<1x4x14x128xf32, #tpu.memory_space<vmem>>, vector<1x1x8x16xf32>
    %607 = vector.shape_cast %606 : vector<1x1x8x16xf32> to vector<8x16xf32>
    %c0_572 = arith.constant 0 : index
    %c2_573 = arith.constant 2 : index
    %c0_574 = arith.constant 0 : index
    %c6_575 = arith.constant 6 : index
    %608 = vector.load %arg4[%c0_572, %c2_573, %c0_574, %c6_575] : memref<1x4x14x128xf32, #tpu.memory_space<vmem>>, vector<1x1x8x16xf32>
    %609 = vector.shape_cast %608 : vector<1x1x8x16xf32> to vector<8x16xf32>
    %610 = arith.subf %607, %609 : vector<8x16xf32>
    %c0_576 = arith.constant 0 : index
    %c2_577 = arith.constant 2 : index
    %c6_578 = arith.constant 6 : index
    %c0_579 = arith.constant 0 : index
    %611 = vector.load %arg4[%c0_576, %c2_577, %c6_578, %c0_579] : memref<1x4x14x128xf32, #tpu.memory_space<vmem>>, vector<1x1x8x16xf32>
    %612 = vector.shape_cast %611 : vector<1x1x8x16xf32> to vector<8x16xf32>
    %613 = arith.subf %610, %612 : vector<8x16xf32>
    %c0_580 = arith.constant 0 : index
    %c2_581 = arith.constant 2 : index
    %c6_582 = arith.constant 6 : index
    %c6_583 = arith.constant 6 : index
    %614 = vector.load %arg4[%c0_580, %c2_581, %c6_582, %c6_583] : memref<1x4x14x128xf32, #tpu.memory_space<vmem>>, vector<1x1x8x16xf32>
    %615 = vector.shape_cast %614 : vector<1x1x8x16xf32> to vector<8x16xf32>
    %616 = arith.addf %613, %615 : vector<8x16xf32>
    %617 = arith.subf %597, %605 : vector<8x16xf32>
    %618 = arith.addf %597, %605 : vector<8x16xf32>
    %619 = arith.mulf %617, %617 : vector<8x16xf32>
    %620 = arith.mulf %616, %616 : vector<8x16xf32>
    %cst_584 = arith.constant 4.000000e+00 : f32
    %621 = vector.broadcast %cst_584 : f32 to vector<8x16xf32>
    %622 = arith.mulf %621, %620 : vector<8x16xf32>
    %623 = arith.addf %619, %622 : vector<8x16xf32>
    %cst_585 = arith.constant 1.53787009E-12 : f32
    %624 = vector.broadcast %cst_585 : f32 to vector<8x16xf32>
    %625 = arith.addf %623, %624 : vector<8x16xf32>
    %626 = math.sqrt %625 : vector<8x16xf32>
    %627 = arith.addf %618, %626 : vector<8x16xf32>
    %cst_586 = arith.constant 5.000000e-01 : f32
    %628 = vector.broadcast %cst_586 : f32 to vector<8x16xf32>
    %629 = arith.mulf %628, %627 : vector<8x16xf32>
    %630 = arith.addf %587, %629 : vector<8x16xf32>
    %c0_587 = arith.constant 0 : index
    %c3_588 = arith.constant 3 : index
    %c3_589 = arith.constant 3 : index
    %c3_590 = arith.constant 3 : index
    %631 = vector.load %arg4[%c0_587, %c3_588, %c3_589, %c3_590] : memref<1x4x14x128xf32, #tpu.memory_space<vmem>>, vector<1x1x8x16xf32>
    %632 = vector.shape_cast %631 : vector<1x1x8x16xf32> to vector<8x16xf32>
    %c0_591 = arith.constant 0 : index
    %c3_592 = arith.constant 3 : index
    %c3_593 = arith.constant 3 : index
    %c0_594 = arith.constant 0 : index
    %633 = vector.load %arg4[%c0_591, %c3_592, %c3_593, %c0_594] : memref<1x4x14x128xf32, #tpu.memory_space<vmem>>, vector<1x1x8x16xf32>
    %634 = vector.shape_cast %633 : vector<1x1x8x16xf32> to vector<8x16xf32>
    %cst_595 = arith.constant 2.000000e+00 : f32
    %635 = vector.broadcast %cst_595 : f32 to vector<8x16xf32>
    %636 = arith.mulf %635, %632 : vector<8x16xf32>
    %637 = arith.subf %634, %636 : vector<8x16xf32>
    %c0_596 = arith.constant 0 : index
    %c3_597 = arith.constant 3 : index
    %c3_598 = arith.constant 3 : index
    %c6_599 = arith.constant 6 : index
    %638 = vector.load %arg4[%c0_596, %c3_597, %c3_598, %c6_599] : memref<1x4x14x128xf32, #tpu.memory_space<vmem>>, vector<1x1x8x16xf32>
    %639 = vector.shape_cast %638 : vector<1x1x8x16xf32> to vector<8x16xf32>
    %640 = arith.addf %637, %639 : vector<8x16xf32>
    %c0_600 = arith.constant 0 : index
    %c3_601 = arith.constant 3 : index
    %c0_602 = arith.constant 0 : index
    %c3_603 = arith.constant 3 : index
    %641 = vector.load %arg4[%c0_600, %c3_601, %c0_602, %c3_603] : memref<1x4x14x128xf32, #tpu.memory_space<vmem>>, vector<1x1x8x16xf32>
    %642 = vector.shape_cast %641 : vector<1x1x8x16xf32> to vector<8x16xf32>
    %cst_604 = arith.constant 2.000000e+00 : f32
    %643 = vector.broadcast %cst_604 : f32 to vector<8x16xf32>
    %644 = arith.mulf %643, %632 : vector<8x16xf32>
    %645 = arith.subf %642, %644 : vector<8x16xf32>
    %c0_605 = arith.constant 0 : index
    %c3_606 = arith.constant 3 : index
    %c6_607 = arith.constant 6 : index
    %c3_608 = arith.constant 3 : index
    %646 = vector.load %arg4[%c0_605, %c3_606, %c6_607, %c3_608] : memref<1x4x14x128xf32, #tpu.memory_space<vmem>>, vector<1x1x8x16xf32>
    %647 = vector.shape_cast %646 : vector<1x1x8x16xf32> to vector<8x16xf32>
    %648 = arith.addf %645, %647 : vector<8x16xf32>
    %c0_609 = arith.constant 0 : index
    %c3_610 = arith.constant 3 : index
    %c0_611 = arith.constant 0 : index
    %c0_612 = arith.constant 0 : index
    %649 = vector.load %arg4[%c0_609, %c3_610, %c0_611, %c0_612] : memref<1x4x14x128xf32, #tpu.memory_space<vmem>>, vector<1x1x8x16xf32>
    %650 = vector.shape_cast %649 : vector<1x1x8x16xf32> to vector<8x16xf32>
    %c0_613 = arith.constant 0 : index
    %c3_614 = arith.constant 3 : index
    %c0_615 = arith.constant 0 : index
    %c6_616 = arith.constant 6 : index
    %651 = vector.load %arg4[%c0_613, %c3_614, %c0_615, %c6_616] : memref<1x4x14x128xf32, #tpu.memory_space<vmem>>, vector<1x1x8x16xf32>
    %652 = vector.shape_cast %651 : vector<1x1x8x16xf32> to vector<8x16xf32>
    %653 = arith.subf %650, %652 : vector<8x16xf32>
    %c0_617 = arith.constant 0 : index
    %c3_618 = arith.constant 3 : index
    %c6_619 = arith.constant 6 : index
    %c0_620 = arith.constant 0 : index
    %654 = vector.load %arg4[%c0_617, %c3_618, %c6_619, %c0_620] : memref<1x4x14x128xf32, #tpu.memory_space<vmem>>, vector<1x1x8x16xf32>
    %655 = vector.shape_cast %654 : vector<1x1x8x16xf32> to vector<8x16xf32>
    %656 = arith.subf %653, %655 : vector<8x16xf32>
    %c0_621 = arith.constant 0 : index
    %c3_622 = arith.constant 3 : index
    %c6_623 = arith.constant 6 : index
    %c6_624 = arith.constant 6 : index
    %657 = vector.load %arg4[%c0_621, %c3_622, %c6_623, %c6_624] : memref<1x4x14x128xf32, #tpu.memory_space<vmem>>, vector<1x1x8x16xf32>
    %658 = vector.shape_cast %657 : vector<1x1x8x16xf32> to vector<8x16xf32>
    %659 = arith.addf %656, %658 : vector<8x16xf32>
    %660 = arith.subf %640, %648 : vector<8x16xf32>
    %661 = arith.addf %640, %648 : vector<8x16xf32>
    %662 = arith.mulf %660, %660 : vector<8x16xf32>
    %663 = arith.mulf %659, %659 : vector<8x16xf32>
    %cst_625 = arith.constant 4.000000e+00 : f32
    %664 = vector.broadcast %cst_625 : f32 to vector<8x16xf32>
    %665 = arith.mulf %664, %663 : vector<8x16xf32>
    %666 = arith.addf %662, %665 : vector<8x16xf32>
    %cst_626 = arith.constant 1.53787009E-12 : f32
    %667 = vector.broadcast %cst_626 : f32 to vector<8x16xf32>
    %668 = arith.addf %666, %667 : vector<8x16xf32>
    %669 = math.sqrt %668 : vector<8x16xf32>
    %670 = arith.addf %661, %669 : vector<8x16xf32>
    %cst_627 = arith.constant 5.000000e-01 : f32
    %671 = vector.broadcast %cst_627 : f32 to vector<8x16xf32>
    %672 = arith.mulf %671, %670 : vector<8x16xf32>
    %673 = arith.addf %630, %672 : vector<8x16xf32>
    %cst_628 = arith.constant 2.500000e-01 : f32
    %674 = vector.broadcast %cst_628 : f32 to vector<8x16xf32>
    %675 = arith.mulf %673, %674 : vector<8x16xf32>
    %cst_629 = arith.constant 0.000000e+00 : f32
    %cst_630 = arith.constant 1.000000e+00 : f32
    %676 = vector.broadcast %cst_629 : f32 to vector<8x16xf32>
    %677 = arith.maximumf %676, %675 : vector<8x16xf32>
    %678 = vector.broadcast %cst_630 : f32 to vector<8x16xf32>
    %679 = arith.minimumf %678, %677 : vector<8x16xf32>
    %c0_631 = arith.constant 0 : index
    %c11 = arith.constant 11 : index
    %c0_632 = arith.constant 0 : index
    %c0_633 = arith.constant 0 : index
    %680 = vector.load %arg3[%c0_631, %c11, %c0_632, %c0_633] : memref<1x12x8x16xf32, #tpu.memory_space<vmem>>, vector<1x1x8x16xf32>
    %681 = vector.shape_cast %680 : vector<1x1x8x16xf32> to vector<8x16xf32>
    %682 = vector.shape_cast %679 : vector<8x16xf32> to vector<1x1x8x16xf32>
    tpu.vector_store %arg3[%c0_631, %c11, %c0_632, %c0_633], %682 {strides = array<i32>} : memref<1x12x8x16xf32, #tpu.memory_space<vmem>>, vector<1x1x8x16xf32>,
    return
  }
  func.func @transform_1(%arg0: i32, %arg1: i32) -> (i32, i32, i32, i32) {
    %c0_i32 = arith.constant 0 : i32
    %c0_i32_0 = arith.constant 0 : i32
    %c0_i32_1 = arith.constant 0 : i32
    return %arg0, %c0_i32, %arg1, %c0_i32_0 : i32, i32, i32, i32
  }
}

</mosaic_0001>

<bundles_post_ra>
// kernel: tpu_custom_call.1
= control target key start
LH: loop header
LB: loop body
LE: loop exit
PB: predicated region body
PF: predicated region fallthrough
CT: control target
= control target key end

     0   :  { %6 = vsyncpa [#allocation6], 0  ;;  %s1810_s0 = inlined_call_operand.vmem [shape: f32[2,4,22,128], index: 0, kind: input, shape index: {}]   ;;  %s1811_s1 = inlined_call_operand.hbm [shape: f32[2,12,16,16], index: 1, kind: output, shape index: {}]  }
   0x1   :  { %8 = vsyncpa [#allocation6 + $0x1], 0  ;;  %s1188_s6 = smov 0   ;;  %s1190_s7 = smov 0  }
   0x2   :  { %s1192_s8 = smov 0   ;;  %s1194_s9 = smov 0  }
   0x3   :  { %s1196_s10 = smov 0  }
   0x4 LB: > { %s20_s11 = sadd.s32 1, %s1159_s8  ;;  %s23_s12 = sadd.s32 1, %s1163_s9  ;;  %s1167_s10 = sphi %s1196_s10, %s14_s10   ;;  %s1163_s9 = sphi %s1194_s9, %s1832_s9   ;;  %s1159_s8 = sphi %s1192_s8, %s1831_s8   ;;  %s1155_s7 = sphi %s1190_s7, %s1830_s7   ;;  %s1151_s6 = sphi %s1188_s6, %s1829_s6  }
   0x5   : > { %p21_p0 = scmp.ge.s32.totalorder %s20_s11, 2  ;;  %s991_s13 = sadd.s32 4294967295, %s1167_s10  }
   0x6   : > { %p41_p1 = scmp.ne.s32.totalorder %s1155_s7, %s1151_s6  ;;  %p42_p3 = scmp.eq.s32.totalorder %s991_s13, 3 }
   0x7   : > { %s1834_s11 = smov (%p21_p0, %s20_s11), 0  ;;  %s1836_s12 = smov (!%p21_p0, %s23_s12), %s1163_s9 }
   0x8   : > { %p25_p2 = scmp.ge.s32.totalorder %s1836_s12, 2  ;;  %s28_s14 = ssub.s32 %s1159_s8, %s1834_s11 }
   0x9   : > { %p1225_p4 = por %p42_p3, %p41_p1  ;;  %s32_s17 = sadd.s32 1, %s1155_s7 }
   0xa   : > { %s1838_s12 = smov (%p25_p2, %s1836_s12), 0  ;;  %p36_p5 = scmp.eq.s32.totalorder %s1167_s10, 3 }
   0xb   : > { %s27_s16 = ssub.s32 %s1163_s9, %s1838_s12  ;;  %p993_p9 = scmp.ge.s32.totalorder %s1167_s10, 4 }
   0xc   : > { %s29_s18 = sor.u32 %s28_s14, %s27_s16 }
   0xd   : > { %p30_p6 = scmp.eq.s32.totalorder %s29_s18, 0  ;;  %p992_p7 = scmp.ne.s32.totalorder %s29_s18, 0 }
   0xe   : > { %51 = sbr.rel (%p993_p9) target bundleno = 400 (0x190), region = 12 }
   0xf   : > { %s1234_s19 = scalar_select %p30_p6, %s1155_s7, %s32_s17  }
  0x10   : > { %p1236_p8 = por %p992_p7, %p36_p5 }
  0x15   : > { %s56_s21 = sand.u32 1, %s1155_s7   ;;  %s994_s23 = sshll.u32 %s1159_s8, 3 }
  0x16   : > { %s1014_s22 = smul.u32 96, %s56_s21 }
  0x17   : > { %s60_s24 = smul.u32 96, %s1163_s9 }
  0x18   : > { %s1249_s29 = scalar_lea.vmem [#allocation5], %s1014_s22 }
  0x19   : > { %s61_s25 = sadd.s32 %s994_s23, %s60_s24 }
  0x1a   : > { %s62_s28 = scalar_lea.vmem %s1810_s0, %s61_s25 }
  0x1b   : > { %v106_v0 = vld [vmem:[%s62_s28] sm:$0xff]  ;;  %v108_v1 = vld [vmem:[%s62_s28 + $0x18] sm:$0xff]  ;;  %v110_v2 = vld [vmem:[%s62_s28 + $0x30] sm:$0xff] }
  0x1c   : > { %107 = vst [vmem:[#allocation2] sm:$0xff] %v106_v0  ;;  %109 = vst [vmem:[#allocation2 + $0x10] sm:$0xff] %v108_v1  ;;  %v112_v3 = vld [vmem:[%s62_s28 + $0x48] sm:$0xff]  ;;  %v996_v5 = vld [vmem:[%s62_s28 + $0x20] sm:$0x3f] }
  0x1d   : > { %111 = vst [vmem:[#allocation2 + $0x20] sm:$0xff] %v110_v2  ;;  %v995_v4 = vld [vmem:[%s62_s28 + $0x8] sm:$0x3f]  ;;  %113 = vst [vmem:[#allocation2 + $0x30] sm:$0xff] %v112_v3  ;;  %v997_v6 = vld [vmem:[%s62_s28 + $0x38] sm:$0x3f] }
  0x1e   : > { %124 = vst [vmem:[#allocation2 + $0x8] sm:$0x3f] %v995_v4  ;;  %126 = vst [vmem:[#allocation2 + $0x18] sm:$0x3f] %v996_v5  ;;  %v998_v7 = vld [vmem:[%s62_s28 + $0x50] sm:$0x3f] }
  0x1f   : > { %128 = vst [vmem:[#allocation2 + $0x28] sm:$0x3f] %v997_v6  ;;  %130 = vst [vmem:[#allocation2 + $0x38] sm:$0x3f] %v998_v7 }
  0x20   : > { %134 = vsyncadd [#allocation4], 896 }
  0x21   : > { %1143 = dma.done.wait [#allocation4], 896 }
  0x22   : > { %1144 = vsyncadd [#allocation4], 4294966400  ;;  %s1169_s30 = smov 124   ;;  %s1170_s2 = smov 126  }
  0x23   : > { %v1277_v16 = vld [vmem:[#allocation2] sm:$0xff]  ;;  %v1279_v18 = vld [vmem:[#allocation2 + $0x10] sm:$0xff]  ;;  %s1171_s3 = smov 127   ;;  %s1172_s4 = smov 122  }
  0x24   : > { %v145_v20 = vadd.f32 %v1279_v18, %v1277_v16  ;;  %v1283_v22 = vld [vmem:[#allocation2 + $0x20] sm:$0xff]  ;;  %v1289_v24 = vld [vmem:[#allocation2 + $0x30] sm:$0xff]  ;;  %s1173_s5 = smov 125   ;;  %s1015_s13 = smul.u32 24, %s1163_s9 }
  0x25   : > { %v1251_v8 = vld [vmem:[#allocation2 + $0x1] sm:$0xff]  ;;  %v1261_v11 = vld [vmem:[#allocation2 + $0x13] sm:$0xff]  ;;  %1819 = vst [vmem:[#allocation10_spill] sm:$0xff] %v1283_v22  ;;  %1820 = vst [vmem:[#allocation11_spill] sm:$0xff] %v1289_v24  ;;  %s913_s17 = sshll.u32 %s1249_s29, 4  ;;  %s1174_s24 = smov [#allocation5]   ;;  %s1761_s17 = int_to_ptr.vmem [resolvable:$true] %s913_s17 }
  0x26   : > { %v1253_v9 = vld [vmem:[#allocation2 + $0x2] sm:$0xff]  ;;  %478 = vrot.lane.b32.xlu1 %v1251_v8, %s1169_s30  ;;  %v1263_v12 = vld [vmem:[#allocation2 + $0x11] sm:$0xff]  ;;  %v1271_v15 = vmul.f32 2.0, %v1261_v11  ;;  %v150_v27 = vadd.f32 %v1283_v22, %v145_v20  ;;  %s910_s14 = sadd.s32 %s1159_s8, %s1015_s13  ;;  %s1767_s8 = scalar_lea.sflag [#allocation6], %s56_s21 }
  0x27   : > { %v1257_v10 = vld [vmem:[#allocation2 + $0x3] sm:$0xff]  ;;  %229 = vrot.lane.b32.xlu0 %v1253_v9, %s1170_s2  ;;  %v1265_v13 = vld [vmem:[#allocation2 + $0x12] sm:$0xff]  ;;  %s1010_s16 = sshll.u32 %s910_s14, 7  ;;  %s1095_s9 = scalar_lea.vmem %s1761_s17, 1536 }
  0x28   : > { %v1268_v14 = vmul.f32 2.0, %v1257_v10  ;;  %v141_v17 = vld [vmem:[#allocation2 + $0x8] sm:$0x3f]  ;;  %v144_v19 = vld [vmem:[#allocation2 + $0x18] sm:$0x3f]  ;;  %v155_v29 = vadd.f32 %v1289_v24, %v150_v27  ;;  %v272_v42 = vsub.f32 %v1265_v13, %v1271_v15  ;;  %v521_v49 = vsub.f32 %v1263_v12, %v1271_v15  ;;  %s1759_s23 = scalar_lea.hbm %s1811_s1, %s1010_s16  ;;  %p1096_p10 = scmp.ne.s32.totalorder %s1761_s17, %s1095_s9 }
  0x29   : > { %v146_v21 = vadd.f32 %v144_v19, %v141_v17  ;;  %v149_v23 = vld [vmem:[#allocation2 + $0x28] sm:$0x3f]  ;;  %v154_v25 = vld [vmem:[#allocation2 + $0x38] sm:$0x3f]  ;;  %v762_v19 = vsub.f32 %v1279_v18, %v1271_v15  ;;  %s1099_s25 = sshll.u32 %s1174_s24, 4  ;;  %s1100_s25 = int_to_ptr.vmem [resolvable:$false] %s1099_s25 }
  0x2a   : > { %525 = vrot.lane.b32.xlu1 %v1263_v12, %s1169_s30  ;;  %v1291_v26 = vld [vmem:[#allocation2 + $0x22] sm:$0xff]  ;;  %v1301_v32 = vmul.f32 0.25, %v155_v29  ;;  %v1316_v36 = vld [vmem:[#allocation2 + $0x14] sm:$0xff]  ;;  %v225_v41 = vsub.f32 %v1253_v9, %v1268_v14  ;;  %v474_v46 = vsub.f32 %v1251_v8, %v1268_v14  ;;  %v715_v7 = vsub.f32 %v1277_v16, %v1268_v14  ;;  %p1097_p11 = pnand %p1096_p10, %p1236_p8  ;;  %s1101_s26 = scalar_lea.vmem %s1100_s25, 3072 }
  0x2b   : > { %276 = vrot.lane.b32.xlu0 %v1265_v13, %s1170_s2  ;;  %v151_v28 = vadd.f32 %v149_v23, %v146_v21  ;;  %v1299_v31 = vld [vmem:[#allocation2 + $0x21] sm:$0xff]  ;;  %v1325_v38 = vld [vmem:[#allocation2 + $0x32] sm:$0xff]  ;;  %v274_v44 = vadd.f32 %v1316_v36, %v272_v42  ;;  %p1102_p13 = scmp.lt.s32.totalorder %s1761_s17, %s1100_s25  ;;  %p1103_p0 = scmp.lt.s32.totalorder %s1101_s26, %s1095_s9 }
  0x2c   : > { %159 = vst [vmem:[#allocation3] sm:$0xff] %v1301_v32  ;;  %v1308_v34 = vld [vmem:[#allocation2 + $0x4] sm:$0xff]  ;;  %v1337_v40 = vld [vmem:[#allocation2 + $0x15] sm:$0xff]  ;;  %p1098_p12 = pneg %p1097_p11 }
  0x2d   : > { %v156_v30 = vadd.f32 %v154_v25, %v151_v28  ;;  %v1314_v35 = vld [vmem:[#allocation2 + $0x23] sm:$0xff]  ;;  %v1347_v43 = vld [vmem:[#allocation2 + $0x31] sm:$0xff]  ;;  %v227_v45 = vadd.f32 %v1308_v34, %v225_v41  ;;  %v523_v52 = vadd.f32 %v1337_v40, %v521_v49  ;;  %p1104_p1 = por %p1103_p0, %p1102_p13 }
  0x2e   : > { %262 = vrot.lane.b32.xlu1 %v1271_v15, %s1171_s3  ;;  %v1319_v37 = vmul.f32 2.0, %v1314_v35  ;;  %v1331_v39 = vld [vmem:[#allocation2 + $0x5] sm:$0xff]  ;;  %v1359_v47 = vld [vmem:[#allocation2 + $0x33] sm:$0xff] }
  0x2f   : > { %215 = vrot.lane.b32.xlu0 %v1268_v14, %s1171_s3  ;;  %v158_v33 = vmul.f32 0.25, %v156_v30  ;;  %v1361_v48 = vld [vmem:[#allocation2 + $0x24] sm:$0xff]  ;;  %v1366_v50 = vmul.f32 2.0, %v1359_v47  ;;  %v476_v51 = vadd.f32 %v1331_v39, %v474_v46  ;;  %v1395_v58 = vld [vmem:[#allocation2 + $0x34] sm:$0xff]  ;;  %p1105_p2 = pnand %p1104_p1, %p1098_p12 }
  0x30   : > { %v320_v53 = vsub.f32 %v1291_v26, %v1319_v37  ;;  %v1382_v54 = vld [vmem:[#allocation2 + $0x25] sm:$0xff]  ;;  %v569_v55 = vsub.f32 %v1299_v31, %v1319_v37  ;;  %v1404_v61 = vld [vmem:[#allocation2 + $0x35] sm:$0xff]  ;;  %v810_v27 = vsub.f32 %v1283_v22, %v1319_v37 }
  0x31   : > { %160 = vst [vmem:[#allocation3 + $0x8] sm:$0x3f] %v158_v33  ;;  %v368_v59 = vsub.f32 %v1325_v38, %v1366_v50  ;;  %v617_v60 = vsub.f32 %v1347_v43, %v1366_v50  ;;  %v1455_v6 = vld [vmem:[#allocation2 + $0x6] sm:$0xff]  ;;  %v1463_v17 = vld [vmem:[#allocation2 + $0x16] sm:$0xff]  ;;  %v858_v33 = vsub.f32 %v1289_v24, %v1366_v50 }
  0x32   : > { %464 = vrot.lane.b32.xlu1 %v1268_v14, %s1170_s2  ;;  %v322_v56 = vadd.f32 %v1361_v48, %v320_v53  ;;  %v571_v57 = vadd.f32 %v1382_v54, %v569_v55  ;;  %1821 = vst [vmem:[#allocation12_spill] sm:$0xff] %v1463_v17  ;;  %v717_v20 = vadd.f32 %v1455_v6, %v715_v7  ;;  %v1485_v28 = vld [vmem:[#allocation2 + $0x26] sm:$0xff]  ;;  %v1494_v41 = vld [vmem:[#allocation2 + $0x36] sm:$0xff] }
  0x33   : > { %324 = vrot.lane.b32.xlu0 %v1291_v26, %s1170_s2  ;;  %v619_v62 = vadd.f32 %v1404_v61, %v617_v60  ;;  %v370_v63 = vadd.f32 %v1395_v58, %v368_v59  ;;  %v764_v23 = vadd.f32 %v1463_v17, %v762_v19  ;;  %1822 = vst [vmem:[#allocation13_spill] sm:$0xff] %v1485_v28  ;;  %1823 = vst [vmem:[#allocation14_spill] sm:$0xff] %v1494_v41 }
  0x34   : > { %v860_v46 = vadd.f32 %v1494_v41, %v858_v33 }
  0x36   : > { %573 = vrot.lane.b32.xlu1 %v1299_v31, %s1169_s30 }
  0x37   : > { %511 = vrot.lane.b32.xlu0 %v1271_v15, %s1170_s2 }
  0x38   : > { %v1414_v0 = vld [vmem:[#allocation3 + $0x2] sm:$0xff] }
  0x39   : > { %v1416_v1 = vld [vmem:[#allocation3 + $0x3] sm:$0xff] }
  0x3a   : > { %235 = vrot.lane.b32.xlu1 %v1308_v34, %s1170_s2  ;;  %v1418_v2 = vld [vmem:[#allocation3 + $0x1] sm:$0xff]  ;;  %v1423_v3 = vmul.f32 2.0, %v1416_v1 }
  0x3b   : > { %220 = vrot.lane.b32.xlu0 %v1257_v10, %s1170_s2  ;;  %v1431_v4 = vld [vmem:[#allocation3 + $0x4] sm:$0xff] }
  0x3c   : > { %v1437_v5 = vld [vmem:[#allocation3 + $0x5] sm:$0xff] }
  0x3d   : > { %v1521_v59 = vld [vmem:[#allocation3 + $0x6] sm:$0xff] }
  0x3e   : > { %282 = vrot.lane.b32.xlu1 %v1316_v36, %s1170_s2 }
  0x3f   : > { %267 = vrot.lane.b32.xlu0 %v1261_v11, %s1170_s2 }
  0x42   : > { %372 = vrot.lane.b32.xlu1 %v1325_v38, %s1170_s2 }
  0x43   : > { %310 = vrot.lane.b32.xlu0 %v1319_v37, %s1171_s3 }
  0x46   : > { %484 = vrot.lane.b32.xlu1 %v1331_v39, %s1169_s30 }
  0x47   : > { %469 = vrot.lane.b32.xlu0 %v1257_v10, %s1169_s30 }
  0x4a   : > { %531 = vrot.lane.b32.xlu1 %v1337_v40, %s1169_s30 }
  0x4b   : > { %516 = vrot.lane.b32.xlu0 %v1261_v11, %s1169_s30 }
  0x4e   : > { %621 = vrot.lane.b32.xlu1 %v1347_v43, %s1169_s30 }
  0x4f   : > { %559 = vrot.lane.b32.xlu0 %v1319_v37, %s1170_s2 }
  0x52   : > { %287 = vrot.lane.b32.xlu1 %v274_v44, %s1171_s3 }
  0x53   : > { %240 = vrot.lane.b32.xlu0 %v227_v45, %s1171_s3  ;;  %v174_v45 = vsub.f32 %v1414_v0, %v1423_v3 }
  0x56   : > { %330 = vrot.lane.b32.xlu1 %v1361_v48, %s1170_s2 }
  0x57   : > { %315 = vrot.lane.b32.xlu0 %v1314_v35, %s1170_s2 }
  0x5a   : > { %489 = vrot.lane.b32.xlu1 %v476_v51, %s1170_s2  ;;  %v423_v51 = vsub.f32 %v1418_v2, %v1423_v3 }
  0x5b   : > { %358 = vrot.lane.b32.xlu0 %v1366_v50, %s1171_s3 }
  0x5e   : > { %564 = vrot.lane.b32.xlu1 %v1314_v35, %s1169_s30 }
  0x5f   : > { %536 = vrot.lane.b32.xlu0 %v523_v52, %s1170_s2  ;;  %v176_v52 = vadd.f32 %v1431_v4, %v174_v45 }
  0x62   : > { %607 = vrot.lane.b32.xlu1 %v1366_v50, %s1170_s2 }
  0x63   : > { %579 = vrot.lane.b32.xlu0 %v1382_v54, %s1169_s30 }
  0x66   : > { %363 = vrot.lane.b32.xlu1 %v1359_v47, %s1170_s2 }
  0x67   : > { %335 = vrot.lane.b32.xlu0 %v322_v56, %s1171_s3  ;;  %v425_v56 = vadd.f32 %v1437_v5, %v423_v51 }
  0x69   : > { %v445_v7 = vmax.f32 %v425_v56, 0.0 }
  0x6a   : > { %584 = vrot.lane.b32.xlu1 %v571_v57, %s1170_s2  ;;  %v196_v57 = vmax.f32 %v176_v52, 0.0 }
  0x6b   : > { %378 = vrot.lane.b32.xlu0 %v1395_v58, %s1170_s2 }
  0x6e   : > { %627 = vrot.lane.b32.xlu1 %v1404_v61, %s1169_s30 }
  0x6f   : > { %612 = vrot.lane.b32.xlu0 %v1359_v47, %s1169_s30 }
  0x72   : > { %632 = vrot.lane.b32.xlu1 %v619_v62, %s1170_s2 }
  0x73   : > { %383 = vrot.lane.b32.xlu0 %v370_v63, %s1171_s3  ;;  %v197_v63 = vmin.f32 %v196_v57, 1.0 }
  0x76   : > { %427 = vrot.lane.b32.xlu1 %v1418_v2, %s1169_s30 }
  0x77   : > { %178 = vrot.lane.b32.xlu0 %v1414_v0, %s1170_s2 }
  0x7a   : > { %413 = vrot.lane.b32.xlu1 %v1423_v3, %s1170_s2 }
  0x7b   : > { %164 = vrot.lane.b32.xlu0 %v1423_v3, %s1171_s3 }
  0x7e   : > { %184 = vrot.lane.b32.xlu1 %v1431_v4, %s1170_s2 }
  0x7f   : > { %169 = vrot.lane.b32.xlu0 %v1416_v1, %s1170_s2 }
  0x82   : > { %433 = vrot.lane.b32.xlu1 %v1437_v5, %s1169_s30 }
  0x83   : > { %418 = vrot.lane.b32.xlu0 %v1416_v1, %s1169_s30 }
  0x86   : > { %766 = vrot.lane.b32.xlu1 %v1279_v18, %s1172_s4 }
  0x87   : > { %719 = vrot.lane.b32.xlu0 %v1277_v16, %s1172_s4 }
  0x8a   : > { %752 = vrot.lane.b32.xlu1 %v1271_v15, %s1173_s5 }
  0x8b   : > { %705 = vrot.lane.b32.xlu0 %v1268_v14, %s1173_s5 }
  0x8e   : > { %710 = vrot.lane.b32.xlu1 %v1257_v10, %s1172_s4 }
  0x8f   : > { %814 = vrot.lane.b32.xlu0 %v1283_v22, %s1172_s4 }
  0x92   : > { %757 = vrot.lane.b32.xlu1 %v1261_v11, %s1172_s4 }
  0x93   : > { %725 = vrot.lane.b32.xlu0 %v1455_v6, %s1172_s4 }
  0x96   : > { %800 = vrot.lane.b32.xlu1 %v1319_v37, %s1173_s5  ;;  %v812_v37 = vadd.f32 %v1485_v28, %v810_v27 }
  0x97   : > { %772 = vrot.lane.b32.xlu0 %v1463_v17, %s1172_s4 }
  0x98   : > { %v1472_v14 = vpop.permute.xlu1 %478 }
  0x99   : > { %v230_v21 = vpop.permute.xlu0 %229 }
  0x9a   : > { %730 = vrot.lane.b32.xlu1 %v717_v20, %s1173_s5 }
  0x9b   : > { %862 = vrot.lane.b32.xlu0 %v1289_v24, %s1172_s4 }
  0x9c   : > { %v1478_v25 = vpop.permute.xlu1 %525 }
  0x9d   : > { %v277_v15 = vpop.permute.xlu0 %276 }
  0x9e   : > { %805 = vrot.lane.b32.xlu1 %v1314_v35, %s1172_s4  ;;  %v279_v45 = vsub.f32 %v1265_v13, %v277_v15  ;;  %v481_v13 = vsub.f32 %v1251_v8, %v1472_v14 }
  0x9f   : > { %777 = vrot.lane.b32.xlu0 %v764_v23, %s1173_s5  ;;  %v446_v23 = vmin.f32 %v445_v7, 1.0 }
  0xa0   : > { %v263_v29 = vpop.permute.xlu1 %262  ;;  %v280_v56 = vsub.f32 %v279_v45, %v1316_v36  ;;  %v528_v36 = vsub.f32 %v1263_v12, %v1478_v25  ;;  %v482_v45 = vsub.f32 %v481_v13, %v1331_v39 }
  0xa1   : > { %v216_v30 = vpop.permute.xlu0 %215  ;;  %v265_v7 = vsub.f32 %v1261_v11, %v263_v29 }
  0xa2   : > { %848 = vrot.lane.b32.xlu1 %v1366_v50, %s1173_s5  ;;  %v529_v14 = vsub.f32 %v528_v36, %v1337_v40 }
  0xa3   : > { %820 = vrot.lane.b32.xlu0 %v1485_v28, %s1172_s4 }
  0xa4   : > { %v1496_v42 = vpop.permute.xlu1 %464 }
  0xa5   : > { %v1498_v44 = vpop.permute.xlu0 %324 }
  0xa6   : > { %853 = vrot.lane.b32.xlu1 %v1359_v47, %s1172_s4  ;;  %v327_v39 = vsub.f32 %v1291_v26, %v1498_v44 }
  0xa7   : > { %825 = vrot.lane.b32.xlu0 %v812_v37, %s1173_s5  ;;  %v232_v37 = vsub.f32 %v1253_v9, %v230_v21  ;;  %v218_v9 = vsub.f32 %v1257_v10, %v216_v30 }
  0xa8   : > { %v1506_v49 = vpop.permute.xlu1 %573 }
  0xa9   : > { %v1508_v50 = vpop.permute.xlu0 %511  ;;  %v233_v52 = vsub.f32 %v232_v37, %v1308_v34  ;;  %v576_v26 = vsub.f32 %v1299_v31, %v1506_v49 }
  0xaa   : > { %873 = vrot.lane.b32.xlu1 %v860_v46, %s1173_s5 }
  0xab   : > { %868 = vrot.lane.b32.xlu0 %v1494_v41, %s1172_s4 }
  0xac   : > { %v236_v53 = vpop.permute.xlu1 %235 }
  0xad   : > { %v221_v55 = vpop.permute.xlu0 %220  ;;  %v238_v57 = vadd.f32 %v236_v53, %v233_v52 }
  0xae   : > { %662 = vrot.lane.b32.xlu1 %v1423_v3, %s1173_s5  ;;  %v223_v15 = vadd.f32 %v221_v55, %v218_v9 }
  0xaf   : > { %676 = vrot.lane.b32.xlu0 %v1301_v32, %s1172_s4  ;;  %v246_v21 = vmul.f32 %v238_v57, %v238_v57 }
  0xb0   : > { %v283_v60 = vpop.permute.xlu1 %282 }
  0xb1   : > { %v268_v62 = vpop.permute.xlu0 %267  ;;  %v285_v41 = vadd.f32 %v283_v60, %v280_v56  ;;  %v247_v52 = vmul.f32 4.0, %v246_v21 }
  0xb2   : > { %682 = vrot.lane.b32.xlu1 %v1521_v59, %s1172_s4  ;;  %v270_v28 = vadd.f32 %v268_v62, %v265_v7  ;;  %v467_v62 = vsub.f32 %v1257_v10, %v1496_v42 }
  0xb3   : > { %667 = vrot.lane.b32.xlu0 %v1416_v1, %s1172_s4 }
  0xb4   : > { %v1527_v19 = vpop.permute.xlu1 %372 }
  0xb5   : > { %v1529_v20 = vpop.permute.xlu0 %310  ;;  %v375_v31 = vsub.f32 %v1325_v38, %v1527_v19 }
  0xb6   : > { %199 = vrot.lane.b32.xlu1 %v197_v63, %s1173_s5  ;;  %v313_v49 = vsub.f32 %v1314_v35, %v1529_v20 }
  0xb8   : > { %v485_v27 = vpop.permute.xlu1 %484 }
  0xb9   : > { %v470_v33 = vpop.permute.xlu0 %469  ;;  %v487_v8 = vadd.f32 %v485_v27, %v482_v45  ;;  %v514_v27 = vsub.f32 %v1261_v11, %v1508_v50  ;;  %v328_v50 = vsub.f32 %v327_v39, %v1361_v48 }
  0xba   : > { %448 = vrot.lane.b32.xlu1 %v446_v23, %s1173_s5  ;;  %v293_v23 = vmul.f32 %v285_v41, %v285_v41  ;;  %v1559_v40 = vadd.f32 %v470_v33, %v467_v62 }
  0xbb   : > { %v495_v13 = vmul.f32 %v487_v8, %v487_v8 }
  0xbc   : > { %v532_v46 = vpop.permute.xlu1 %531  ;;  %v294_v29 = vmul.f32 4.0, %v293_v23 }
  0xbd   : > { %v517_v51 = vpop.permute.xlu0 %516  ;;  %v534_v57 = vadd.f32 %v532_v46, %v529_v14  ;;  %v496_v36 = vmul.f32 4.0, %v495_v13 }
  0xbe   : > { %v1561_v42 = vadd.f32 %v517_v51, %v514_v27 }
  0xbf   : > { %v542_v21 = vmul.f32 %v534_v57, %v534_v57 }
  0xc0   : > { %v1537_v24 = vpop.permute.xlu1 %621 }
  0xc1   : > { %v1539_v63 = vpop.permute.xlu0 %559  ;;  %v624_v14 = vsub.f32 %v1347_v43, %v1537_v24 }
  0xc4   : > { %v288_v34 = vpop.permute.xlu1 %287 }
  0xc5   : > { %v241_v37 = vpop.permute.xlu0 %240  ;;  %v290_v53 = vsub.f32 %v270_v28, %v288_v34 }
  0xc6   : > { %v243_v60 = vsub.f32 %v223_v15, %v241_v37 }
  0xc7   : > { %v292_v56 = vmul.f32 %v290_v53, %v290_v53 }
  0xc8   : > { %v245_v30 = vmul.f32 %v243_v60, %v243_v60  ;;  %v331_v22 = vpop.permute.xlu1 %330  ;;  %v543_v60 = vmul.f32 4.0, %v542_v21 }
  0xc9   : > { %v316_v17 = vpop.permute.xlu0 %315  ;;  %v295_v41 = vadd.f32 %v294_v29, %v292_v56  ;;  %v333_v45 = vadd.f32 %v331_v22, %v328_v50  ;;  %v577_v56 = vsub.f32 %v576_v26, %v1382_v54  ;;  %v562_v22 = vsub.f32 %v1314_v35, %v1539_v63 }
  0xca   : > { %v248_v55 = vadd.f32 %v247_v52, %v245_v30  ;;  %v1585_v57 = vadd.f32 %v316_v17, %v313_v49 }
  0xcb   : > { %v296_v12 = vadd.f32 1.5378701e-12, %v295_v41  ;;  %v291_v41 = vadd.f32 %v288_v34, %v270_v28  ;;  %v341_v54 = vmul.f32 %v333_v45, %v333_v45 }
  0xcc   : > { %v249_v25 = vadd.f32 1.5378701e-12, %v248_v55  ;;  %v1553_v7 = vpop.permute.xlu1 %489  ;;  %v244_v55 = vadd.f32 %v241_v37, %v223_v15 }
  0xcd   : > { %v1555_v9 = vpop.permute.xlu0 %358  ;;  %1071 = vrsqrt.f32 %v296_v12  ;;  %v492_v46 = vsub.f32 %v1559_v40, %v1553_v7  ;;  %vm299_vm0 = vcmp.eq.f32.partialorder %v296_v12, inf  ;;  %vm301_vm1 = vcmp.eq.f32.partialorder %v296_v12, 0.0 }
  0xce   : > { %1073 = vrsqrt.f32 %v249_v25  ;;  %v302_v43 = vand.u32 2147483648, %v296_v12  ;;  %vm252_vm2 = vcmp.eq.f32.partialorder %v249_v25, inf  ;;  %vm254_vm3 = vcmp.eq.f32.partialorder %v249_v25, 0.0 }
  0xcf   : > { %v494_v53 = vmul.f32 %v492_v46, %v492_v46  ;;  %v255_v15 = vand.u32 2147483648, %v249_v25 }
  0xd0   : > { %v565_v44 = vpop.permute.xlu1 %564 }
  0xd1   : > { %v1567_v23 = vpop.permute.xlu0 %536  ;;  %v497_v51 = vadd.f32 %v496_v36, %v494_v53  ;;  %v1595_v13 = vadd.f32 %v565_v44, %v562_v22  ;;  %v342_v36 = vmul.f32 4.0, %v341_v54 }
  0xd2   : > { %v539_v33 = vsub.f32 %v1561_v42, %v1567_v23 }
  0xd3   : > { %v1579_v48 = vadd.f32 1.5378701e-12, %v497_v51 }
  0xd4   : > { %v541_v52 = vmul.f32 %v539_v33, %v539_v33  ;;  %v1572_v29 = vpop.permute.xlu1 %607 }
  0xd5   : > { %v580_v30 = vpop.permute.xlu0 %579  ;;  %1075 = vrsqrt.f32 %v1579_v48  ;;  %vm501_vm4 = vcmp.eq.f32.partialorder %v1579_v48, inf  ;;  %vm503_vm5 = vcmp.eq.f32.partialorder %v1579_v48, 0.0 }
  0xd6   : > { %v544_v8 = vadd.f32 %v543_v60, %v541_v52  ;;  %v582_v38 = vadd.f32 %v580_v30, %v577_v56  ;;  %v376_v52 = vsub.f32 %v375_v31, %v1395_v58  ;;  %v625_v30 = vsub.f32 %v624_v14, %v1404_v61 }
  0xd7   : > { %v1072_v62 = vpop.eup %1071  ;;  %v361_v31 = vsub.f32 %v1359_v47, %v1555_v9  ;;  %v610_v61 = vsub.f32 %v1359_v47, %v1572_v29  ;;  %v504_v14 = vand.u32 2147483648, %v1579_v48 }
  0xd8   : > { %v1074_v19 = vpop.eup %1073  ;;  %v298_v20 = vmul.f32 %v1072_v62, %v296_v12  ;;  %v1588_v39 = vadd.f32 1.5378701e-12, %v544_v8  ;;  %v364_v27 = vpop.permute.xlu1 %363  ;;  %v590_v21 = vmul.f32 %v582_v38, %v582_v38 }
  0xd9   : > { %v1590_v24 = vpop.permute.xlu0 %335  ;;  %v251_v63 = vmul.f32 %v1074_v19, %v249_v25 }
  0xda   : > { %v338_v28 = vsub.f32 %v1585_v57, %v1590_v24  ;;  %v300_v17 = vsel %vm299_vm0, %v296_v12, %v298_v20  ;;  %1077 = vrsqrt.f32 %v1588_v39  ;;  %vm548_vm6 = vcmp.eq.f32.partialorder %v1588_v39, inf }
  0xdb   : > { %v303_v34 = vsel %vm301_vm1, %v302_v43, %v300_v17  ;;  %v253_v37 = vsel %vm252_vm2, %v249_v25, %v251_v63  ;;  %v591_v25 = vmul.f32 4.0, %v590_v21  ;;  %v1621_v43 = vadd.f32 %v364_v27, %v361_v31 }
  0xdc   : > { %v304_v46 = vadd.f32 %v303_v34, %v291_v41  ;;  %v256_v26 = vsel %vm254_vm3, %v255_v15, %v253_v37  ;;  %v340_v50 = vmul.f32 %v338_v28, %v338_v28  ;;  %v1597_v53 = vpop.permute.xlu1 %584  ;;  %v540_v37 = vadd.f32 %v1567_v23, %v1561_v42 }
  0xdd   : > { %v379_v33 = vpop.permute.xlu0 %378  ;;  %v257_v60 = vadd.f32 %v256_v26, %v244_v55  ;;  %v587_v12 = vsub.f32 %v1595_v13, %v1597_v53  ;;  %v493_v55 = vadd.f32 %v1553_v7, %v1559_v40  ;;  %vm550_vm7 = vcmp.eq.f32.partialorder %v1588_v39, 0.0 }
  0xde   : > { %v305_v45 = vmul.f32 0.5, %v304_v46  ;;  %v343_v51 = vadd.f32 %v342_v36, %v340_v50  ;;  %v381_v8 = vadd.f32 %v379_v33, %v376_v52 }
  0xdf   : > { %v258_v56 = vmul.f32 0.5, %v257_v60  ;;  %v589_v44 = vmul.f32 %v587_v12, %v587_v12  ;;  %v1076_v62 = vpop.eup %1075 }
  0xe0   : > { %v1603_v49 = vadd.f32 1.5378701e-12, %v343_v51  ;;  %v628_v22 = vpop.permute.xlu1 %627  ;;  %v500_v58 = vmul.f32 %v1076_v62, %v1579_v48  ;;  %v389_v63 = vmul.f32 %v381_v8, %v381_v8 }
  0xe1   : > { %v613_v41 = vpop.permute.xlu0 %612  ;;  %v1605_v54 = vadd.f32 %v305_v45, %v258_v56  ;;  %v592_v38 = vadd.f32 %v591_v25, %v589_v44  ;;  %v630_v19 = vadd.f32 %v628_v22, %v625_v30 }
  0xe2   : > { %1079 = vrsqrt.f32 %v1603_v49  ;;  %v502_v40 = vsel %vm501_vm4, %v1579_v48, %v500_v58  ;;  %v1629_v34 = vadd.f32 %v613_v41, %v610_v61  ;;  %v551_v48 = vand.u32 2147483648, %v1588_v39 }
  0xe3   : > { %v1618_v20 = vadd.f32 1.5378701e-12, %v592_v38  ;;  %v638_v9 = vmul.f32 %v630_v19, %v630_v19  ;;  %v505_v17 = vsel %vm503_vm5, %v504_v14, %v502_v40  ;;  %v390_v50 = vmul.f32 4.0, %v389_v63 }
  0xe4   : > { %v1078_v7 = vpop.eup %1077  ;;  %v1623_v28 = vpop.permute.xlu1 %632  ;;  %v506_v27 = vadd.f32 %v505_v17, %v493_v55  ;;  %vm347_vm8 = vcmp.eq.f32.partialorder %v1603_v49, inf  ;;  %vm349_vm11 = vcmp.eq.f32.partialorder %v1603_v49, 0.0  ;;  %vm194_vm4 = vcmask 130048  }
  0xe5   : > { %v1625_v29 = vpop.permute.xlu0 %383  ;;  %v547_v15 = vmul.f32 %v1078_v7, %v1588_v39  ;;  %1081 = vrsqrt.f32 %v1618_v20  ;;  %v635_v46 = vsub.f32 %v1629_v34, %v1623_v28  ;;  %v639_v23 = vmul.f32 4.0, %v638_v9 }
  0xe6   : > { %v386_v26 = vsub.f32 %v1621_v43, %v1625_v29  ;;  %v507_v52 = vmul.f32 0.5, %v506_v27  ;;  %vm596_vm9 = vcmp.eq.f32.partialorder %v1618_v20, inf  ;;  %v599_v17 = vand.u32 2147483648, %v1618_v20 }
  0xe7   : > { %v549_v21 = vsel %vm548_vm6, %v1588_v39, %v547_v15  ;;  %v637_v12 = vmul.f32 %v635_v46, %v635_v46  ;;  %v350_v15 = vand.u32 2147483648, %v1603_v49  ;;  %vm598_vm10 = vcmp.eq.f32.partialorder %v1618_v20, 0.0 }
  0xe8   : > { %v552_v36 = vsel %vm550_vm7, %v551_v48, %v549_v21  ;;  %v428_v60 = vpop.permute.xlu1 %427  ;;  %v388_v45 = vmul.f32 %v386_v26, %v386_v26 }
  0xe9   : > { %v179_v33 = vpop.permute.xlu0 %178  ;;  %v553_v42 = vadd.f32 %v552_v36, %v540_v37  ;;  %v640_v25 = vadd.f32 %v639_v23, %v637_v12  ;;  %v672_v37 = vsub.f32 %v1301_v32, %v1423_v3 }
  0xea   : > { %v181_v51 = vsub.f32 %v1414_v0, %v179_v33  ;;  %v391_v39 = vadd.f32 %v390_v50, %v388_v45 }
  0xeb   : > { %v554_v56 = vmul.f32 0.5, %v553_v42  ;;  %v1644_v41 = vadd.f32 1.5378701e-12, %v640_v25  ;;  %v674_v23 = vadd.f32 %v1521_v59, %v672_v37 }
  0xec   : > { %v1080_v44 = vpop.eup %1079  ;;  %v414_v8 = vpop.permute.xlu1 %413  ;;  %v1646_v62 = vadd.f32 1.5378701e-12, %v391_v39  ;;  %v182_v38 = vsub.f32 %v181_v51, %v1431_v4  ;;  %v430_v4 = vsub.f32 %v1418_v2, %v428_v60  ;;  %v588_v2 = vadd.f32 %v1597_v53, %v1595_v13 }
  0xed   : > { %v165_v30 = vpop.permute.xlu0 %164  ;;  %v1642_v22 = vadd.f32 %v554_v56, %v507_v52  ;;  %v346_v0 = vmul.f32 %v1080_v44, %v1603_v49  ;;  %1083 = vrsqrt.f32 %v1644_v41  ;;  %v416_v14 = vsub.f32 %v1416_v1, %v414_v8 }
  0xee   : > { %v167_v55 = vsub.f32 %v1416_v1, %v165_v30  ;;  %1085 = vrsqrt.f32 %v1646_v62  ;;  %v431_v60 = vsub.f32 %v430_v4, %v1437_v5  ;;  %v636_v53 = vadd.f32 %v1623_v28, %v1629_v34 }
  0xef   : > { %v1082_v19 = vpop.eup %1081  ;;  %v348_v9 = vsel %vm347_vm8, %v1603_v49, %v346_v0  ;;  %vm644_vm12 = vcmp.eq.f32.partialorder %v1644_v41, inf  ;;  %v387_v5 = vadd.f32 %v1625_v29, %v1621_v43  ;;  %vm646_vm13 = vcmp.eq.f32.partialorder %v1644_v41, 0.0 }
  0xf0   : > { %v595_v58 = vmul.f32 %v1082_v19, %v1618_v20  ;;  %v185_v61 = vpop.permute.xlu1 %184  ;;  %v351_v36 = vsel %vm349_vm11, %v350_v15, %v348_v9  ;;  %v647_v56 = vand.u32 2147483648, %v1644_v41  ;;  %vm395_vm14 = vcmp.eq.f32.partialorder %v1646_v62, inf }
  0xf1   : > { %v170_v31 = vpop.permute.xlu0 %169  ;;  %v187_v63 = vadd.f32 %v185_v61, %v182_v38  ;;  %vm397_vm15 = vcmp.eq.f32.partialorder %v1646_v62, 0.0  ;;  %v398_v43 = vand.u32 2147483648, %v1646_v62 }
  0xf2   : > { %v597_v7 = vsel %vm596_vm9, %v1618_v20, %v595_v58  ;;  %v172_v40 = vadd.f32 %v170_v31, %v167_v55  ;;  %v339_v20 = vadd.f32 %v1590_v24, %v1585_v57 }
  0xf3   : > { %v600_v46 = vsel %vm598_vm10, %v599_v17, %v597_v7  ;;  %v204_v33 = vmax.f32 %v187_v63, 0.0 }
  0xf4   : > { %v188_v48 = vmax.f32 %v172_v40, 0.0  ;;  %v434_v27 = vpop.permute.xlu1 %433  ;;  %v601_v42 = vadd.f32 %v600_v46, %v588_v2  ;;  %v352_v13 = vadd.f32 %v351_v36, %v339_v20 }
  0xf5   : > { %v419_v21 = vpop.permute.xlu0 %418  ;;  %v205_v24 = vmin.f32 %v204_v33, 1.0  ;;  %v436_v52 = vadd.f32 %v434_v27, %v431_v60 }
  0xf6   : > { %v421_v26 = vadd.f32 %v419_v21, %v416_v14  ;;  %v189_v50 = vmin.f32 %v188_v48, 1.0  ;;  %v602_v28 = vmul.f32 0.5, %v601_v42  ;;  %v353_v30 = vmul.f32 0.5, %v352_v13  ;;  %v1825_v13 = vld [vmem:[#allocation10_spill] sm:$0xff] }
  0xf7   : > { %v1084_v45 = vpop.eup %1083  ;;  %v453_v58 = vmax.f32 %v436_v52, 0.0  ;;  %v690_v14 = vmax.f32 %v674_v23, 0.0 }
  0xf8   : > { %191 = vrot.lane.b32.xlu0 %v189_v50, %s1170_s2  ;;  %v437_v3 = vmax.f32 %v421_v26, 0.0  ;;  %v767_v12 = vpop.permute.xlu1 %766  ;;  %v1086_v51 = vpop.eup %1085  ;;  %v643_v57 = vmul.f32 %v1084_v45, %v1644_v41  ;;  %v603_v61 = vadd.f32 %v602_v28, %v1642_v22  ;;  %v354_v40 = vadd.f32 %v353_v30, %v1605_v54  ;;  %v1824_v26 = vld [vmem:[#allocation12_spill] sm:$0xff] }
  0xf9   : > { %v720_v49 = vpop.permute.xlu0 %719  ;;  %v394_v25 = vmul.f32 %v1086_v51, %v1646_v62  ;;  %v691_v37 = vmin.f32 %v690_v14, 1.0 }
  0xfa   : > { %v645_v34 = vsel %vm644_vm12, %v1644_v41, %v643_v57  ;;  %v438_v29 = vmin.f32 %v437_v3, 1.0  ;;  %v722_v38 = vsub.f32 %v1277_v16, %v720_v49  ;;  %v769_v16 = vsub.f32 %v1279_v18, %v767_v12 }
  0xfb   : > { %v648_v8 = vsel %vm646_vm13, %v647_v56, %v645_v34  ;;  %v396_v55 = vsel %vm395_vm14, %v1646_v62, %v394_v25  ;;  %v454_v62 = vmin.f32 %v453_v58, 1.0  ;;  %v1826_v34 = vld [vmem:[#allocation13_spill] sm:$0xff] }
  0xfc   : > { %207 = vrot.lane.b32.xlu0 %v205_v24, %s1170_s2  ;;  %v753_v44 = vpop.permute.xlu1 %752  ;;  %v649_v19 = vadd.f32 %v648_v8, %v636_v53  ;;  %v399_v0 = vsel %vm397_vm15, %v398_v43, %v396_v55  ;;  %v723_v9 = vsub.f32 %v722_v38, %v1455_v6  ;;  %v770_v54 = vsub.f32 %v769_v16, %v1824_v26  ;;  %v1827_v8 = vld [vmem:[#allocation11_spill] sm:$0xff] }
  0xfd   : > { %v706_v39 = vpop.permute.xlu0 %705  ;;  %v400_v31 = vadd.f32 %v399_v0, %v387_v5  ;;  %v755_v6 = vsub.f32 %v1261_v11, %v753_v44 }
  0xfe   : > { %v650_v41 = vmul.f32 0.5, %v649_v19  ;;  %v708_v21 = vsub.f32 %v1257_v10, %v706_v39 }
  0xff   : > { %v401_v63 = vmul.f32 0.5, %v400_v31 }
 0x100   : > { %440 = vrot.lane.b32.xlu0 %v438_v29, %s1171_s3  ;;  %v711_v4 = vpop.permute.xlu1 %710  ;;  %v651_v17 = vadd.f32 %v650_v41, %v603_v61 }
 0x101   : > { %v815_v7 = vpop.permute.xlu0 %814  ;;  %v402_v15 = vadd.f32 %v401_v63, %v354_v40  ;;  %v1699_v20 = vadd.f32 %v711_v4, %v708_v21  ;;  %v1828_v4 = vld [vmem:[#allocation14_spill] sm:$0xff] }
 0x102   : > { %v652_v2 = vmul.f32 0.25, %v651_v17  ;;  %v817_v53 = vsub.f32 %v1825_v13, %v815_v7 }
 0x103   : > { %v403_v27 = vmul.f32 0.25, %v402_v15 }
 0x104   : > { %456 = vrot.lane.b32.xlu0 %v454_v62, %s1171_s3  ;;  %v758_v48 = vpop.permute.xlu1 %757  ;;  %v653_v60 = vmax.f32 %v652_v2, 0.0  ;;  %v818_v43 = vsub.f32 %v817_v53, %v1826_v34 }
 0x105   : > { %v726_v22 = vpop.permute.xlu0 %725  ;;  %v404_v36 = vmax.f32 %v403_v27, 0.0  ;;  %v1704_v45 = vadd.f32 %v758_v48, %v755_v6 }
 0x106   : > { %v728_v46 = vadd.f32 %v726_v22, %v723_v9  ;;  %v654_v49 = vmin.f32 %v653_v60, 1.0 }
 0x107   : > { %v405_v33 = vmin.f32 %v404_v36, 1.0 }
 0x108   : > { %693 = vrot.lane.b32.xlu0 %v691_v37, %s1173_s5  ;;  %v801_v50 = vpop.permute.xlu1 %800  ;;  %v736_v42 = vmul.f32 %v728_v46, %v728_v46 }
 0x109   : > { %v773_v18 = vpop.permute.xlu0 %772  ;;  %407 = vrot.lane.b32.xlu1 %v405_v33, %s1170_s2  ;;  %v803_v52 = vsub.f32 %v1314_v35, %v801_v50 }
 0x10a   : > { %v775_v3 = vadd.f32 %v773_v18, %v770_v54  ;;  %v737_v12 = vmul.f32 4.0, %v736_v42 }
 0x10c   : > { %v1702_v23 = vpop.permute.xlu1 %730  ;;  %v783_v5 = vmul.f32 %v775_v3, %v775_v3 }
 0x10d   : > { %v863_v10 = vpop.permute.xlu0 %862  ;;  %v733_v11 = vsub.f32 %v1699_v20, %v1702_v23  ;;  %656 = vrot.lane.b32.xlu1 %v654_v49, %s1171_s3 }
 0x10e   : > { %v784_v28 = vmul.f32 4.0, %v783_v5  ;;  %v865_v55 = vsub.f32 %v1827_v8, %v863_v10 }
 0x10f   : > { %v735_v51 = vmul.f32 %v733_v11, %v733_v11 }
 0x110   : > { %v806_v24 = vpop.permute.xlu1 %805  ;;  %v866_v40 = vsub.f32 %v865_v55, %v1828_v4 }
 0x111   : > { %v778_v57 = vpop.permute.xlu0 %777  ;;  %v738_v56 = vadd.f32 %v737_v12, %v735_v51  ;;  %v1714_v38 = vadd.f32 %v806_v24, %v803_v52 }
 0x112   : > { %v780_v25 = vsub.f32 %v1704_v45, %v778_v57 }
 0x113   : > { %v739_v29 = vadd.f32 1.5378701e-12, %v738_v56 }
 0x114   : > { %v782_v39 = vmul.f32 %v780_v25, %v780_v25  ;;  %v849_v30 = vpop.permute.xlu1 %848 }
 0x115   : > { %v821_v44 = vpop.permute.xlu0 %820  ;;  %1087 = vrsqrt.f32 %v739_v29  ;;  %v851_v58 = vsub.f32 %v1359_v47, %v849_v30  ;;  %vm742_vm0 = vcmp.eq.f32.partialorder %v739_v29, inf  ;;  %vm744_vm1 = vcmp.eq.f32.partialorder %v739_v29, 0.0 }
 0x116   : > { %v785_v19 = vadd.f32 %v784_v28, %v782_v39  ;;  %v823_v0 = vadd.f32 %v821_v44, %v818_v43  ;;  %v745_v6 = vand.u32 2147483648, %v739_v29 }
 0x118   : > { %v786_v35 = vadd.f32 1.5378701e-12, %v785_v19  ;;  %v831_v31 = vmul.f32 %v823_v0, %v823_v0  ;;  %v854_v41 = vpop.permute.xlu1 %853 }
 0x119   : > { %v826_v61 = vpop.permute.xlu0 %825  ;;  %v1718_v7 = vadd.f32 %v854_v41, %v851_v58 }
 0x11a   : > { %v828_v14 = vsub.f32 %v1714_v38, %v826_v61  ;;  %1089 = vrsqrt.f32 %v786_v35  ;;  %v832_v63 = vmul.f32 4.0, %v831_v31  ;;  %vm789_vm2 = vcmp.eq.f32.partialorder %v786_v35, inf }
 0x11b   : > { %v792_v50 = vand.u32 2147483648, %v786_v35  ;;  %vm791_vm3 = vcmp.eq.f32.partialorder %v786_v35, 0.0  ;;  %v829_v28 = vadd.f32 %v826_v61, %v1714_v38 }
 0x11c   : > { %v830_v9 = vmul.f32 %v828_v14, %v828_v14  ;;  %v874_v16 = vpop.permute.xlu1 %873 }
 0x11d   : > { %v869_v62 = vpop.permute.xlu0 %868  ;;  %v876_v37 = vsub.f32 %v1718_v7, %v874_v16  ;;  %v877_v19 = vadd.f32 %v874_v16, %v1718_v7 }
 0x11e   : > { %v833_v17 = vadd.f32 %v832_v63, %v830_v9  ;;  %v871_v15 = vadd.f32 %v869_v62, %v866_v40 }
 0x11f   : > { %v1088_v47 = vpop.eup %1087  ;;  %v878_v27 = vmul.f32 %v876_v37, %v876_v37 }
 0x120   : > { %v834_v22 = vadd.f32 1.5378701e-12, %v833_v17  ;;  %v879_v48 = vmul.f32 %v871_v15, %v871_v15  ;;  %v663_v2 = vpop.permute.xlu1 %662  ;;  %v741_v46 = vmul.f32 %v1088_v47, %v739_v29 }
 0x121   : > { %v677_v21 = vpop.permute.xlu0 %676  ;;  %v665_v36 = vsub.f32 %v1416_v1, %v663_v2  ;;  %v781_v1 = vadd.f32 %v778_v57, %v1704_v45 }
 0x122   : > { %1091 = vrsqrt.f32 %v834_v22  ;;  %v880_v26 = vmul.f32 4.0, %v879_v48  ;;  %v679_v54 = vsub.f32 %v1301_v32, %v677_v21  ;;  %v743_v10 = vsel %vm742_vm0, %v739_v29, %v741_v46 }
 0x123   : > { %v734_v32 = vadd.f32 %v1702_v23, %v1699_v20  ;;  %v746_v51 = vsel %vm744_vm1, %v745_v6, %v743_v10  ;;  %vm837_vm5 = vcmp.eq.f32.partialorder %v834_v22, inf  ;;  %v840_v45 = vand.u32 2147483648, %v834_v22 }
 0x124   : > { %v1090_v18 = vpop.eup %1089  ;;  %v881_v33 = vadd.f32 %v880_v26, %v878_v27  ;;  %v683_v42 = vpop.permute.xlu1 %682  ;;  %v680_v3 = vsub.f32 %v679_v54, %v1521_v59  ;;  %vm839_vm6 = vcmp.eq.f32.partialorder %v834_v22, 0.0 }
 0x125   : > { %v668_v60 = vpop.permute.xlu0 %667  ;;  %v788_v49 = vmul.f32 %v1090_v18, %v786_v35  ;;  %v747_v20 = vadd.f32 %v746_v51, %v734_v32 }
 0x126   : > { %v670_v12 = vadd.f32 %v668_v60, %v665_v36  ;;  %v882_v11 = vadd.f32 1.5378701e-12, %v881_v33  ;;  %v685_v13 = vadd.f32 %v683_v42, %v680_v3 }
 0x127   : > { %v790_v53 = vsel %vm789_vm2, %v786_v35, %v788_v49  ;;  %v748_v39 = vmul.f32 0.5, %v747_v20 }
 0x128   : > { %v686_v5 = vmax.f32 %v670_v12, 0.0  ;;  %v793_v24 = vsel %vm791_vm3, %v792_v50, %v790_v53  ;;  %1093 = vrsqrt.f32 %v882_v11  ;;  %v200_v59 = vpop.permute.xlu1 %199  ;;  %v698_v56 = vmax.f32 %v685_v13, 0.0 }
 0x129   : > { %999 = vst.msk [vmem:[%s1249_s29 + $0x8] sm:$0xff] %vm194_vm4, %v200_v59  ;;  %v794_v23 = vadd.f32 %v793_v24, %v781_v1  ;;  %vm885_vm7 = vcmp.eq.f32.partialorder %v882_v11, inf  ;;  %v888_v0 = vand.u32 2147483648, %v882_v11  ;;  %vm887_vm8 = vcmp.eq.f32.partialorder %v882_v11, 0.0 }
 0x12a   : > { %v687_v52 = vmin.f32 %v686_v5, 1.0  ;;  %v699_v57 = vmin.f32 %v698_v56, 1.0 }
 0x12b   : > { %v795_v44 = vmul.f32 0.5, %v794_v23 }
 0x12c   : > { %v1092_v25 = vpop.eup %1091  ;;  %1006 = vst.msk [vmem:[%s1249_s29 + $0x30] sm:$0xff] %vm194_vm4, %v687_v52  ;;  %v449_v43 = vpop.permute.xlu1 %448  ;;  %1008 = vst.msk [vmem:[%s1249_s29 + $0x40] sm:$0xff] %vm194_vm4, %v699_v57 }
 0x12d   : > { %v836_v34 = vmul.f32 %v1092_v25, %v834_v22  ;;  %1003 = vst.msk [vmem:[%s1249_s29 + $0x20] sm:$0xff] %vm194_vm4, %v449_v43  ;;  %v796_v38 = vadd.f32 %v795_v44, %v748_v39 }
 0x12f   : > { %v838_v29 = vsel %vm837_vm5, %v834_v22, %v836_v34 }
 0x130   : > { %v841_v30 = vsel %vm839_vm6, %v840_v45, %v838_v29 }
 0x131   : > { %v842_v8 = vadd.f32 %v841_v30, %v829_v28 }
 0x132   : > { %v1094_v55 = vpop.eup %1093 }
 0x133   : > { %v843_v58 = vmul.f32 0.5, %v842_v8  ;;  %v884_v35 = vmul.f32 %v1094_v55, %v882_v11 }
 0x135   : > { %v886_v31 = vsel %vm885_vm7, %v882_v11, %v884_v35  ;;  %v844_v41 = vadd.f32 %v843_v58, %v796_v38 }
 0x136   : > { %v889_v61 = vsel %vm887_vm8, %v888_v0, %v886_v31 }
 0x137   : > { %v890_v14 = vadd.f32 %v889_v61, %v877_v19 }
 0x139   : > { %v891_v4 = vmul.f32 0.5, %v890_v14 }
 0x13b   : > { %v892_v40 = vadd.f32 %v891_v4, %v844_v41 }
 0x13d   : > { %v893_v7 = vmul.f32 0.25, %v892_v40 }
 0x13f   : > { %v894_v63 = vmax.f32 %v893_v7, 0.0 }
 0x141   : > { %v895_v9 = vmin.f32 %v894_v63, 1.0 }
 0x143   : > { %1009 = vst.msk [vmem:[%s1249_s29 + $0x58] sm:$0xff] %vm194_vm4, %v895_v9 }
 0x16a   : > { %v192_v62 = vpop.permute.xlu0 %191 }
 0x16b   : > { %195 = vst.msk [vmem:[%s1249_s29] sm:$0xff] %vm194_vm4, %v192_v62 }
 0x16e   : > { %v208_v16 = vpop.permute.xlu0 %207 }
 0x16f   : > { %1000 = vst.msk [vmem:[%s1249_s29 + $0x10] sm:$0xff] %vm194_vm4, %v208_v16 }
 0x172   : > { %v441_v17 = vpop.permute.xlu0 %440 }
 0x173   : > { %1002 = vst.msk [vmem:[%s1249_s29 + $0x18] sm:$0xff] %vm194_vm4, %v441_v17 }
 0x176   : > { %v457_v15 = vpop.permute.xlu0 %456 }
 0x177   : > { %1004 = vst.msk [vmem:[%s1249_s29 + $0x28] sm:$0xff] %vm194_vm4, %v457_v15 }
 0x17a   : > { %v694_v37 = vpop.permute.xlu0 %693 }
 0x17b   : > { %1007 = vst.msk [vmem:[%s1249_s29 + $0x38] sm:$0xff] %vm194_vm4, %v694_v37  ;;  %v408_v47 = vpop.permute.xlu1 %407 }
 0x17c   : > { %1001 = vst.msk [vmem:[%s1249_s29 + $0x48] sm:$0xff] %vm194_vm4, %v408_v47 }
 0x17f   : > { %v657_v22 = vpop.permute.xlu1 %656 }
 0x180   : > { %1005 = vst.msk [vmem:[%s1249_s29 + $0x50] sm:$0xff] %vm194_vm4, %v657_v22 }
 0x181   : > { %1108 = shalt.err (!%p1105_p2)
}
 0x182   : > { %s1109_s21 = scalar_lea.hbm %s1759_s23, 1536  ;;  %s1113_s29 = scalar_lea.hbm %s1811_s1, 6144 }
 0x183   : > { %p1110_p3 = scmp.ne.s32.totalorder %s1759_s23, %s1109_s21  ;;  %p1114_p7 = scmp.lt.u32.totalorder %s1759_s23, %s1811_s1 }
 0x184   : > { %p1115_p9 = scmp.lt.u32.totalorder %s1113_s29, %s1109_s21  ;;  %p1117_p11 = scmp.lt.u32.totalorder %s1109_s21, %s1759_s23 }
 0x185   : > { %p1111_p5 = pnand %p1110_p3, %p1236_p8 }
 0x186   : > { %p1116_p10 = por %p1115_p9, %p1114_p7 }
 0x187   : > { %p1112_p6 = pneg %p1111_p5 }
 0x188   : > { %p1118_p12 = por %p1117_p11, %p1116_p10 }
 0x18a   : > { %p1119_p13 = pnand %p1118_p12, %p1112_p6 }
 0x18c   : > { %1122 = shalt.err (!%p1119_p13)
}
 0x18d   : > { %s1175_s3 = smov 128   ;;  %s1176_s4 = smov 256  }
 0x18e   : > { %s1177_s5 = smov 8  }
 0x18f   : > { %1016 = dma.vmem_to_hbm [thread:$0]  (%p1236_p8), %s1761_s17, 1536, %s1759_s23, %s1767_s8, %s1175_s3, %s1176_s4, %s1177_s5  }
 0x190 PF: > { %p1022_p0 = scmp.ge.s32.totalorder %s1167_s10, 1  ;;  %s928_s13 = sand.u32 1, %s1151_s6  }
 0x191   : > { %s929_s14 = scalar_lea.sflag [#allocation6], %s928_s13 }
 0x192   : > { %p1019_p1 = pnand %p1022_p0, %p1225_p4 }
 0x194   : > { %1146 = dma.done.wait (!%p1019_p1), %s929_s14, 1536  }
 0x195   : > { %1148 = vsyncadd (!%p1019_p1), %s929_s14, 4294965760  ;;  %s14_s10 = sadd.s32 1, %s1167_s10   ;;  %s1829_s6 = smov %s1155_s7 }
 0x196   : > { %p11_p2 = scmp.ge.s32.totalorder %s14_s10, 5   ;;  %s1830_s7 = smov %s1234_s19 }
 0x197   : > { %s1831_s8 = smov %s1834_s11  ;;  %s1832_s9 = smov %s1838_s12 }
 0x198   :  { %13 = sbr.rel (!%p11_p2) target bundleno = 4 (0x4), region = 110 }
 0x19f   :  { %934 = vsyncpa [#allocation6], 1 }
 0x1a0   :  { %936 = vsyncpa [#allocation6 + $0x1], 1 }
 0x1a1   :  { %937 = vsyncmov [#allocation4] }
 0x1a4   :  { %s938_s15 = vpop.sfrf %937 }
 0x1a5   :  { %p1013_p4 = scmp.ne.s32.totalorder %s938_s15, 0 }
 0x1a7   :  { %942 = shalt.err (%p1013_p4)  }

</bundles_post_ra>
